<compile_context>
chip_gen: v7x
topology: tpu7x:2x2x1
jax: 0.10.0
libtpu: 0.0.40
codegen_flags: <defaults>
</compile_context>

<pallas_src>
import functools

import jax
import jax.numpy as jnp
from jax import lax
from jax.experimental import pallas as pl
from jax.experimental.pallas import tpu as pltpu


# ----------------------------------------------------------------------------
# Kernel: a stack of bidirectional SRU layers with identical shapes.
#
# grid = (B // TB, NL)
#   axis 0 ("parallel") : batch chunks of TB sequences (pipelined / megacore)
#   axis 1 ("arbitrary"): layer index; o_ref is revisited for every layer of a
#                         batch chunk -> resident in VMEM, doubles as the
#                         inter-layer activation buffer.
#
# refs:
#   x_ref : (L, TB, n_in)    time-major input block (input of the first layer)
#   w_ref : (1, n_in, 2*k*d) bf16, columns permuted on the host to
#           [f_f | f_b | r_f | r_b | xt_f | xt_b | (xp_f | xp_b)]
#   b_ref : (1, 1, 4*d)      f32 [f_f | f_b | r_f | r_b]
#   o_ref : (L, TB, 2*d)     f32 output block == resident activation [h_f | h_b]
#   u_ref : (L*TB, 2*k*d)    f32 scratch holding the projection / gates
# ----------------------------------------------------------------------------
def _sru_stack_kernel(x_ref, w_ref, b_ref, o_ref, u_ref, *, L, TB, d, k, TT):
    li = pl.program_id(1)

    if k == 3:
        # Highway input x' is the raw layer input.  Keep the running activation
        # in o_ref so every fused layer (and the highway path) reads one place.
        @pl.when(li == 0)
        def _():
            o_ref[...] = x_ref[...]

        xin = o_ref[...].reshape(L * TB, 2 * d)
    else:
        # k == 4: x' is a projected slot of u; the raw input is only needed for
        # the matmul (k==4 only occurs for a stand-alone layer-0 call).
        xin = x_ref[...].reshape(L * TB, x_ref.shape[2])

    # --- projection on the MXU: bf16 inputs, f32 accumulation ---------------
    u_ref[...] = jnp.dot(xin.astype(jnp.bfloat16), w_ref[0],
                         preferred_element_type=jnp.float32)
    # forget/reset gates: one contiguous, lane-aligned 4*d slab (dense VPU/EUP)
    u_ref[:, 0:4 * d] = jax.nn.sigmoid(u_ref[:, 0:4 * d] + b_ref[0])

    # --- bidirectional recurrence: time blocked by TT, statically unrolled ---
    nblk = L // TT
    bstride = TT * TB

    def block_step(blk, carry):
        c_f, c_b = carry
        tf = blk * TT                    # first forward time of this block
        tb = (nblk - 1 - blk) * TT       # first backward time of this block
        rf = blk * bstride               # matching row offsets into u_ref
        rb = (nblk - 1 - blk) * bstride

        for s in range(TT):              # static unroll: fwd/bwd chains interleave
            # -- forward direction, global time tf + s --
            row = pl.multiple_of(rf + s * TB, TB)
            us = u_ref[pl.ds(row, TB), :]                    # (TB, 2kd) dense load
            f_g = us[:, 0 * d:1 * d]
            r_g = us[:, 2 * d:3 * d]
            x_t = us[:, 4 * d:5 * d]
            x_p = us[:, 6 * d:7 * d] if k == 4 else o_ref[tf + s, :, 0:d]
            c_f = (c_f - x_t) * f_g + x_t
            o_ref[tf + s, :, 0:d] = (jnp.tanh(c_f) - x_p) * r_g + x_p

            # -- backward direction, global time tb + (TT - 1 - s) --
            sb = TT - 1 - s
            row = pl.multiple_of(rb + sb * TB, TB)
            us = u_ref[pl.ds(row, TB), :]
            f_g = us[:, 1 * d:2 * d]
            r_g = us[:, 3 * d:4 * d]
            x_t = us[:, 5 * d:6 * d]
            x_p = us[:, 7 * d:8 * d] if k == 4 else o_ref[tb + sb, :, d:2 * d]
            c_b = (c_b - x_t) * f_g + x_t
            o_ref[tb + sb, :, d:2 * d] = (jnp.tanh(c_b) - x_p) * r_g + x_p
        return c_f, c_b

    c0 = jnp.zeros((TB, d), jnp.float32)
    _ = lax.fori_loop(0, nblk, block_step, (c0, c0))


def _sru_stack(x_tm, w_stack, b_stack, *, L, B, d, TB, TT):
    """Run a stack of identically-shaped bidirectional SRU layers.

    x_tm    : (L, B, n_in) f32 time-major input
    w_stack : (NL, n_in, 2*k*d) bf16, column-permuted (see _permute_w_columns)
    b_stack : (NL, 1, 4*d) f32
    returns : (L, B, 2*d) f32 output of the last layer of the stack
    """
    NL, n_in, wcols = w_stack.shape
    k = wcols // (2 * d)
    assert wcols == 2 * k * d and k in (3, 4)
    if k == 3:
        assert n_in == 2 * d
    assert B % TB == 0 and L % TT == 0

    kernel = functools.partial(_sru_stack_kernel, L=L, TB=TB, d=d, k=k, TT=TT)
    return pl.pallas_call(
        kernel,
        out_shape=jax.ShapeDtypeStruct((L, B, 2 * d), jnp.float32),
        grid=(B // TB, NL),
        in_specs=[
            pl.BlockSpec((L, TB, n_in), lambda bi, li: (0, bi, 0)),
            pl.BlockSpec((1, n_in, wcols), lambda bi, li: (li, 0, 0)),
            pl.BlockSpec((1, 1, 4 * d), lambda bi, li: (li, 0, 0)),
        ],
        out_specs=pl.BlockSpec((L, TB, 2 * d), lambda bi, li: (0, bi, 0)),
        scratch_shapes=[pltpu.VMEM((L * TB, wcols), jnp.float32)],
        compiler_params=pltpu.CompilerParams(
            dimension_semantics=("parallel", "arbitrary"),
            vmem_limit_bytes=32 * 1024 * 1024,
        ),
    )(x_tm, w_stack, b_stack)


# ----------------------------------------------------------------------------
# Host-side parameter plumbing (layout only, no extra compute on device).
# ----------------------------------------------------------------------------
def init_stacked_brnn_params(key, input_size, hidden_size, num_layers):
    """Synthetic SRUCell parameters (bidirectional), canonical layout:
       W columns per direction [x~ | f | r | (x')]; bias [f_f | f_b | r_f | r_b]."""
    params = []
    d = hidden_size
    for i in range(num_layers):
        n_in = input_size if i == 0 else 2 * d
        k = 4 if n_in != 2 * d else 3
        key, kw, kb = jax.random.split(key, 3)
        scale = (3.0 / n_in) ** 0.5
        w = jax.random.uniform(kw, (n_in, 2 * k * d), jnp.float32, -scale, scale)
        b = 0.1 * jax.random.normal(kb, (1, 4 * d), jnp.float32)
        params.append((w, b))
    return params


def _permute_w_columns(w, d, k):
    """Canonical per-direction [x~|f|r|(x')] columns -> kernel layout
       [f_f|f_b|r_f|r_b|x~_f|x~_b|(x'_f|x'_b)].  One-time host-side permutation."""
    order = [(0, 1), (1, 1), (0, 2), (1, 2), (0, 0), (1, 0)]
    if k == 4:
        order += [(0, 3), (1, 3)]
    cols = [w[:, di * k * d + g * d: di * k * d + (g + 1) * d] for (di, g) in order]
    return jnp.concatenate(cols, axis=1)


def _choose_batch_tile(B, L, d, budget_bytes=12 * 1024 * 1024):
    """Largest multiple-of-8 divisor of B whose resident footprint fits the budget."""
    if B % 8 != 0:
        return B  # full-batch block is always legal for small/odd batches
    def footprint(tb):
        u = 4 * L * tb * 8 * d               # u scratch (worst case k=4, f32)
        io = 2 * (4 * L * tb * 2 * d) * 2    # double-buffered x + out blocks (f32)
        return u + io
    for tb in range(B, 7, -8):
        if B % tb == 0 and footprint(tb) <= budget_bytes:
            return tb
    return 8


def _choose_time_tile(L):
    for tt in (8, 4, 2, 1):
        if L % tt == 0:
            return tt
    return 1


# ----------------------------------------------------------------------------
# StackedBRNN forward (glue in plain JAX; all per-layer compute in Pallas).
# ----------------------------------------------------------------------------
def stacked_brnn_forward(x, params, hidden_size,
                         concat_layers=False, res_net=False, get_all_layers=False):
    """x: (batch, seq, input_size) -> (batch, seq, 2*hidden_size) (default path)."""
    # TODO(synk): dropout paths (dropout_output / rnn_dropout) omitted — eval
    # mode / dropout_rate=0 semantics, which is what the default config computes.
    Bt, T, _ = x.shape
    d = hidden_size
    x_tm = jnp.transpose(x, (1, 0, 2))  # time-major (T, B, n_in)

    # Fuse consecutive layers with identical weight shapes into one pallas_call;
    # per-layer outputs are only materialized when the module flags need them.
    if concat_layers or res_net or get_all_layers:
        groups = [[p] for p in params]
    else:
        groups = []
        for p in params:
            if groups and groups[-1][-1][0].shape == p[0].shape:
                groups[-1].append(p)
            else:
                groups.append([p])

    TB = _choose_batch_tile(Bt, T, d)
    TT = _choose_time_tile(T)

    h = x_tm
    group_outs = []
    for g in groups:
        k = g[0][0].shape[1] // (2 * d)
        w_stack = jnp.stack(
            [_permute_w_columns(w, d, k).astype(jnp.bfloat16) for (w, _) in g])
        b_stack = jnp.stack([b for (_, b) in g])          # (NL, 1, 4d) f32
        h = _sru_stack(h, w_stack, b_stack, L=T, B=Bt, d=d, TB=TB, TT=TT)
        group_outs.append(h)

    def to_batch_major(o):
        return jnp.transpose(o, (1, 0, 2))

    if concat_layers:
        return to_batch_major(jnp.concatenate(group_outs, axis=-1))
    if get_all_layers:
        return [to_batch_major(o) for o in group_outs]
    if res_net:
        acc = group_outs[0]
        for o in group_outs[1:]:
            acc = acc + o
        return to_batch_major(acc)
    return to_batch_major(group_outs[-1])


# ----------------------------------------------------------------------------
# Pure-JAX reference (mirrors the kernel's bf16 projection, f32 recurrence).
# ----------------------------------------------------------------------------
def _sru_layer_ref(x, w, b, d):
    T, Bt, _ = x.shape
    k = w.shape[1] // (2 * d)
    u = jnp.einsum("tbi,io->tbo", x.astype(jnp.bfloat16), w.astype(jnp.bfloat16),
                   preferred_element_type=jnp.float32)
    bv = b.reshape(4 * d)
    outs = []
    for di in range(2):
        off = di * k * d
        xt = u[..., off:off + d]
        f = jax.nn.sigmoid(u[..., off + d:off + 2 * d] + bv[di * d:(di + 1) * d])
        r = jax.nn.sigmoid(u[..., off + 2 * d:off + 3 * d] + bv[(2 + di) * d:(3 + di) * d])
        xp = u[..., off + 3 * d:off + 4 * d] if k == 4 else x[..., di * d:(di + 1) * d]
        seq = (xt, f, r, xp)
        if di == 1:
            seq = tuple(s[::-1] for s in seq)

        def step(c, inp):
            xt_t, f_t, r_t, xp_t = inp
            c = (c - xt_t) * f_t + xt_t
            h = (jnp.tanh(c) - xp_t) * r_t + xp_t
            return c, h

        _, hs = lax.scan(step, jnp.zeros((Bt, d), jnp.float32), seq)
        if di == 1:
            hs = hs[::-1]
        outs.append(hs)
    return jnp.concatenate(outs, axis=-1)


def stacked_brnn_ref(x, params, hidden_size):
    h = jnp.transpose(x, (1, 0, 2))
    for (w, b) in params:
        h = _sru_layer_ref(h, w, b, hidden_size)
    return jnp.transpose(h, (1, 0, 2))


# ----------------------------------------------------------------------------
if __name__ == "__main__":
    batch, seq, input_size, hidden_size, num_layers = 8, 16, 32, 32, 3

    key = jax.random.PRNGKey(0)
    kx, kp = jax.random.split(key)
    x = jax.random.normal(kx, (batch, seq, input_size), jnp.float32)
    params = init_stacked_brnn_params(kp, input_size, hidden_size, num_layers)

    out = jax.block_until_ready(stacked_brnn_forward(x, params, hidden_size))
    assert out.shape == (batch, seq, 2 * hidden_size), out.shape

    ref = jax.block_until_ready(stacked_brnn_ref(x, params, hidden_size))
    if not jnp.allclose(out, ref, rtol=1e-2, atol=1e-2):
        err = float(jnp.max(jnp.abs(out - ref)))
        raise AssertionError(
            f"Pallas StackedBRNN mismatch vs JAX reference (max abs err {err})")

    print("KERNEL_OK")
</pallas_src>

<mosaic_0001>
module attributes {stable_mosaic.version = 11 : i64} {
  func.func @_sru_stack_kernel(%arg0: i32, %arg1: i32, %arg2: memref<16x8x32xf32, #tpu.memory_space<vmem>>, %arg3: memref<1x32x256xbf16, #tpu.memory_space<vmem>>, %arg4: memref<1x1x128xf32, #tpu.memory_space<vmem>>, %arg5: memref<16x8x64xf32, #tpu.memory_space<vmem>>, %arg6: memref<128x256xf32, #tpu.memory_space<vmem>>) attributes {dimension_semantics = [#tpu.dimension_semantics<parallel>, #tpu.dimension_semantics<arbitrary>], iteration_bounds = array<i64: 1, 1>, scalar_prefetch = 0 : i64, scratch_operands = 1 : i64, tpu.core_type = #tpu.core_type<tc>, window_params = [{transform_indices = @transform_0, window_bounds = array<i64: 16, 8, 32>}, {transform_indices = @transform_1, window_bounds = array<i64: 1, 32, 256>}, {transform_indices = @transform_2, window_bounds = array<i64: 1, 1, 128>}, {transform_indices = @transform_3, window_bounds = array<i64: 16, 8, 64>}]} {
    %c0 = arith.constant 0 : index
    %c0_0 = arith.constant 0 : index
    %c0_1 = arith.constant 0 : index
    %0 = vector.load %arg2[%c0, %c0_0, %c0_1] : memref<16x8x32xf32, #tpu.memory_space<vmem>>, vector<16x8x32xf32>
    %1 = vector.shape_cast %0 : vector<16x8x32xf32> to vector<128x32xf32>
    %2 = arith.truncf %1 : vector<128x32xf32> to vector<128x32xbf16>
    %c0_2 = arith.constant 0 : index
    %c0_3 = arith.constant 0 : index
    %c0_4 = arith.constant 0 : index
    %3 = vector.load %arg3[%c0_2, %c0_3, %c0_4] : memref<1x32x256xbf16, #tpu.memory_space<vmem>>, vector<1x32x256xbf16>
    %4 = vector.shape_cast %3 : vector<1x32x256xbf16> to vector<32x256xbf16>
    %cst = arith.constant dense<0.000000e+00> : vector<128x256xf32>
    %5 = tpu.matmul %2, %4, %cst {dimension_numbers = #tpu.dot_dimension_numbers<[1], [0], [0], [1], [0, 0, 1, 1], [], []>} : vector<128x32xbf16>, vector<32x256xbf16>, vector<128x256xf32> -> vector<128x256xf32>
    %c0_5 = arith.constant 0 : index
    %c0_6 = arith.constant 0 : index
    %6 = vector.load %arg6[%c0_5, %c0_6] : memref<128x256xf32, #tpu.memory_space<vmem>>, vector<128x256xf32>
    tpu.vector_store %arg6[%c0_5, %c0_6], %5 {strides = array<i32>} : memref<128x256xf32, #tpu.memory_space<vmem>>, vector<128x256xf32>,
    %c0_7 = arith.constant 0 : index
    %c0_8 = arith.constant 0 : index
    %7 = vector.load %arg6[%c0_7, %c0_8] : memref<128x256xf32, #tpu.memory_space<vmem>>, vector<128x128xf32>
    %c0_9 = arith.constant 0 : index
    %c0_10 = arith.constant 0 : index
    %c0_11 = arith.constant 0 : index
    %8 = vector.load %arg4[%c0_9, %c0_10, %c0_11] : memref<1x1x128xf32, #tpu.memory_space<vmem>>, vector<1x1x128xf32>
    %9 = vector.shape_cast %8 : vector<1x1x128xf32> to vector<1x128xf32>
    %10 = vector.broadcast %9 : vector<1x128xf32> to vector<128x128xf32>
    %11 = arith.addf %7, %10 : vector<128x128xf32>
    %12 = arith.negf %11 : vector<128x128xf32>
    %13 = math.exp %12 : vector<128x128xf32>
    %cst_12 = arith.constant 1.000000e+00 : f32
    %14 = vector.broadcast %cst_12 : f32 to vector<128x128xf32>
    %15 = arith.addf %14, %13 : vector<128x128xf32>
    %16 = arith.divf %14, %15 : vector<128x128xf32>
    %c0_13 = arith.constant 0 : index
    %c0_14 = arith.constant 0 : index
    %17 = vector.load %arg6[%c0_13, %c0_14] : memref<128x256xf32, #tpu.memory_space<vmem>>, vector<128x128xf32>
    tpu.vector_store %arg6[%c0_13, %c0_14], %16 {strides = array<i32>} : memref<128x256xf32, #tpu.memory_space<vmem>>, vector<128x128xf32>,
    %cst_15 = arith.constant 0.000000e+00 : f32
    %18 = vector.broadcast %cst_15 : f32 to vector<8x32xf32>
    %c0_i32 = arith.constant 0 : i32
    %c2_i32 = arith.constant 2 : i32
    %19 = arith.addi %c0_i32, %c2_i32 : i32
    %c1_i32 = arith.constant 1 : i32
    %20:2 = scf.for %arg7 = %c0_i32 to %19 step %c1_i32 iter_args(%arg8 = %18, %arg9 = %18) -> (vector<8x32xf32>, vector<8x32xf32>)  : i32 {
      %c8_i32 = arith.constant 8 : i32
      %21 = arith.muli %arg7, %c8_i32 : i32
      %c1_i32_17 = arith.constant 1 : i32
      %22 = arith.subi %c1_i32_17, %arg7 : i32
      %c8_i32_18 = arith.constant 8 : i32
      %23 = arith.muli %22, %c8_i32_18 : i32
      %c64_i32 = arith.constant 64 : i32
      %24 = arith.muli %arg7, %c64_i32 : i32
      %c1_i32_19 = arith.constant 1 : i32
      %25 = arith.subi %c1_i32_19, %arg7 : i32
      %c64_i32_20 = arith.constant 64 : i32
      %26 = arith.muli %25, %c64_i32_20 : i32
      %c0_i32_21 = arith.constant 0 : i32
      %27 = arith.addi %24, %c0_i32_21 : i32
      %28 = tpu.assume_multiple %27, 8 : i32
      %29 = arith.index_cast %28 : i32 to index
      %c0_22 = arith.constant 0 : index
      %30 = vector.load %arg6[%29, %c0_22] : memref<128x256xf32, #tpu.memory_space<vmem>>, vector<8x256xf32>
      %31 = vector.extract_strided_slice %30 {offsets = [0, 0], sizes = [8, 32], strides = [1, 1]} : vector<8x256xf32> to vector<8x32xf32>
      %32 = vector.extract_strided_slice %30 {offsets = [0, 64], sizes = [8, 32], strides = [1, 1]} : vector<8x256xf32> to vector<8x32xf32>
      %33 = vector.extract_strided_slice %30 {offsets = [0, 128], sizes = [8, 32], strides = [1, 1]} : vector<8x256xf32> to vector<8x32xf32>
      %34 = vector.extract_strided_slice %30 {offsets = [0, 192], sizes = [8, 32], strides = [1, 1]} : vector<8x256xf32> to vector<8x32xf32>
      %35 = arith.subf %arg8, %33 : vector<8x32xf32>
      %36 = arith.mulf %35, %31 : vector<8x32xf32>
      %37 = arith.addf %36, %33 : vector<8x32xf32>
      %38 = math.tanh %37 : vector<8x32xf32>
      %39 = arith.subf %38, %34 : vector<8x32xf32>
      %40 = arith.mulf %39, %32 : vector<8x32xf32>
      %41 = arith.addf %40, %34 : vector<8x32xf32>
      %c0_i32_23 = arith.constant 0 : i32
      %42 = arith.addi %21, %c0_i32_23 : i32
      %43 = arith.index_cast %42 : i32 to index
      %c0_24 = arith.constant 0 : index
      %c0_25 = arith.constant 0 : index
      %44 = vector.load %arg5[%43, %c0_24, %c0_25] : memref<16x8x64xf32, #tpu.memory_space<vmem>>, vector<1x8x32xf32>
      %45 = vector.shape_cast %44 : vector<1x8x32xf32> to vector<8x32xf32>
      %46 = vector.shape_cast %41 : vector<8x32xf32> to vector<1x8x32xf32>
      tpu.vector_store %arg5[%43, %c0_24, %c0_25], %46 {strides = array<i32>} : memref<16x8x64xf32, #tpu.memory_space<vmem>>, vector<1x8x32xf32>,
      %c56_i32 = arith.constant 56 : i32
      %47 = arith.addi %26, %c56_i32 : i32
      %48 = tpu.assume_multiple %47, 8 : i32
      %49 = arith.index_cast %48 : i32 to index
      %c0_26 = arith.constant 0 : index
      %50 = vector.load %arg6[%49, %c0_26] : memref<128x256xf32, #tpu.memory_space<vmem>>, vector<8x256xf32>
      %51 = vector.extract_strided_slice %50 {offsets = [0, 32], sizes = [8, 32], strides = [1, 1]} : vector<8x256xf32> to vector<8x32xf32>
      %52 = vector.extract_strided_slice %50 {offsets = [0, 96], sizes = [8, 32], strides = [1, 1]} : vector<8x256xf32> to vector<8x32xf32>
      %53 = vector.extract_strided_slice %50 {offsets = [0, 160], sizes = [8, 32], strides = [1, 1]} : vector<8x256xf32> to vector<8x32xf32>
      %54 = vector.extract_strided_slice %50 {offsets = [0, 224], sizes = [8, 32], strides = [1, 1]} : vector<8x256xf32> to vector<8x32xf32>
      %55 = arith.subf %arg9, %53 : vector<8x32xf32>
      %56 = arith.mulf %55, %51 : vector<8x32xf32>
      %57 = arith.addf %56, %53 : vector<8x32xf32>
      %58 = math.tanh %57 : vector<8x32xf32>
      %59 = arith.subf %58, %54 : vector<8x32xf32>
      %60 = arith.mulf %59, %52 : vector<8x32xf32>
      %61 = arith.addf %60, %54 : vector<8x32xf32>
      %c7_i32 = arith.constant 7 : i32
      %62 = arith.addi %23, %c7_i32 : i32
      %63 = arith.index_cast %62 : i32 to index
      %c0_27 = arith.constant 0 : index
      %c32 = arith.constant 32 : index
      %64 = vector.load %arg5[%63, %c0_27, %c32] : memref<16x8x64xf32, #tpu.memory_space<vmem>>, vector<1x8x32xf32>
      %65 = vector.shape_cast %64 : vector<1x8x32xf32> to vector<8x32xf32>
      %66 = vector.shape_cast %61 : vector<8x32xf32> to vector<1x8x32xf32>
      tpu.vector_store %arg5[%63, %c0_27, %c32], %66 {strides = array<i32>} : memref<16x8x64xf32, #tpu.memory_space<vmem>>, vector<1x8x32xf32>,
      %c8_i32_28 = arith.constant 8 : i32
      %67 = arith.addi %24, %c8_i32_28 : i32
      %68 = tpu.assume_multiple %67, 8 : i32
      %69 = arith.index_cast %68 : i32 to index
      %c0_29 = arith.constant 0 : index
      %70 = vector.load %arg6[%69, %c0_29] : memref<128x256xf32, #tpu.memory_space<vmem>>, vector<8x256xf32>
      %71 = vector.extract_strided_slice %70 {offsets = [0, 0], sizes = [8, 32], strides = [1, 1]} : vector<8x256xf32> to vector<8x32xf32>
      %72 = vector.extract_strided_slice %70 {offsets = [0, 64], sizes = [8, 32], strides = [1, 1]} : vector<8x256xf32> to vector<8x32xf32>
      %73 = vector.extract_strided_slice %70 {offsets = [0, 128], sizes = [8, 32], strides = [1, 1]} : vector<8x256xf32> to vector<8x32xf32>
      %74 = vector.extract_strided_slice %70 {offsets = [0, 192], sizes = [8, 32], strides = [1, 1]} : vector<8x256xf32> to vector<8x32xf32>
      %75 = arith.subf %37, %73 : vector<8x32xf32>
      %76 = arith.mulf %75, %71 : vector<8x32xf32>
      %77 = arith.addf %76, %73 : vector<8x32xf32>
      %78 = math.tanh %77 : vector<8x32xf32>
      %79 = arith.subf %78, %74 : vector<8x32xf32>
      %80 = arith.mulf %79, %72 : vector<8x32xf32>
      %81 = arith.addf %80, %74 : vector<8x32xf32>
      %c1_i32_30 = arith.constant 1 : i32
      %82 = arith.addi %21, %c1_i32_30 : i32
      %83 = arith.index_cast %82 : i32 to index
      %c0_31 = arith.constant 0 : index
      %c0_32 = arith.constant 0 : index
      %84 = vector.load %arg5[%83, %c0_31, %c0_32] : memref<16x8x64xf32, #tpu.memory_space<vmem>>, vector<1x8x32xf32>
      %85 = vector.shape_cast %84 : vector<1x8x32xf32> to vector<8x32xf32>
      %86 = vector.shape_cast %81 : vector<8x32xf32> to vector<1x8x32xf32>
      tpu.vector_store %arg5[%83, %c0_31, %c0_32], %86 {strides = array<i32>} : memref<16x8x64xf32, #tpu.memory_space<vmem>>, vector<1x8x32xf32>,
      %c48_i32 = arith.constant 48 : i32
      %87 = arith.addi %26, %c48_i32 : i32
      %88 = tpu.assume_multiple %87, 8 : i32
      %89 = arith.index_cast %88 : i32 to index
      %c0_33 = arith.constant 0 : index
      %90 = vector.load %arg6[%89, %c0_33] : memref<128x256xf32, #tpu.memory_space<vmem>>, vector<8x256xf32>
      %91 = vector.extract_strided_slice %90 {offsets = [0, 32], sizes = [8, 32], strides = [1, 1]} : vector<8x256xf32> to vector<8x32xf32>
      %92 = vector.extract_strided_slice %90 {offsets = [0, 96], sizes = [8, 32], strides = [1, 1]} : vector<8x256xf32> to vector<8x32xf32>
      %93 = vector.extract_strided_slice %90 {offsets = [0, 160], sizes = [8, 32], strides = [1, 1]} : vector<8x256xf32> to vector<8x32xf32>
      %94 = vector.extract_strided_slice %90 {offsets = [0, 224], sizes = [8, 32], strides = [1, 1]} : vector<8x256xf32> to vector<8x32xf32>
      %95 = arith.subf %57, %93 : vector<8x32xf32>
      %96 = arith.mulf %95, %91 : vector<8x32xf32>
      %97 = arith.addf %96, %93 : vector<8x32xf32>
      %98 = math.tanh %97 : vector<8x32xf32>
      %99 = arith.subf %98, %94 : vector<8x32xf32>
      %100 = arith.mulf %99, %92 : vector<8x32xf32>
      %101 = arith.addf %100, %94 : vector<8x32xf32>
      %c6_i32 = arith.constant 6 : i32
      %102 = arith.addi %23, %c6_i32 : i32
      %103 = arith.index_cast %102 : i32 to index
      %c0_34 = arith.constant 0 : index
      %c32_35 = arith.constant 32 : index
      %104 = vector.load %arg5[%103, %c0_34, %c32_35] : memref<16x8x64xf32, #tpu.memory_space<vmem>>, vector<1x8x32xf32>
      %105 = vector.shape_cast %104 : vector<1x8x32xf32> to vector<8x32xf32>
      %106 = vector.shape_cast %101 : vector<8x32xf32> to vector<1x8x32xf32>
      tpu.vector_store %arg5[%103, %c0_34, %c32_35], %106 {strides = array<i32>} : memref<16x8x64xf32, #tpu.memory_space<vmem>>, vector<1x8x32xf32>,
      %c16_i32 = arith.constant 16 : i32
      %107 = arith.addi %24, %c16_i32 : i32
      %108 = tpu.assume_multiple %107, 8 : i32
      %109 = arith.index_cast %108 : i32 to index
      %c0_36 = arith.constant 0 : index
      %110 = vector.load %arg6[%109, %c0_36] : memref<128x256xf32, #tpu.memory_space<vmem>>, vector<8x256xf32>
      %111 = vector.extract_strided_slice %110 {offsets = [0, 0], sizes = [8, 32], strides = [1, 1]} : vector<8x256xf32> to vector<8x32xf32>
      %112 = vector.extract_strided_slice %110 {offsets = [0, 64], sizes = [8, 32], strides = [1, 1]} : vector<8x256xf32> to vector<8x32xf32>
      %113 = vector.extract_strided_slice %110 {offsets = [0, 128], sizes = [8, 32], strides = [1, 1]} : vector<8x256xf32> to vector<8x32xf32>
      %114 = vector.extract_strided_slice %110 {offsets = [0, 192], sizes = [8, 32], strides = [1, 1]} : vector<8x256xf32> to vector<8x32xf32>
      %115 = arith.subf %77, %113 : vector<8x32xf32>
      %116 = arith.mulf %115, %111 : vector<8x32xf32>
      %117 = arith.addf %116, %113 : vector<8x32xf32>
      %118 = math.tanh %117 : vector<8x32xf32>
      %119 = arith.subf %118, %114 : vector<8x32xf32>
      %120 = arith.mulf %119, %112 : vector<8x32xf32>
      %121 = arith.addf %120, %114 : vector<8x32xf32>
      %c2_i32_37 = arith.constant 2 : i32
      %122 = arith.addi %21, %c2_i32_37 : i32
      %123 = arith.index_cast %122 : i32 to index
      %c0_38 = arith.constant 0 : index
      %c0_39 = arith.constant 0 : index
      %124 = vector.load %arg5[%123, %c0_38, %c0_39] : memref<16x8x64xf32, #tpu.memory_space<vmem>>, vector<1x8x32xf32>
      %125 = vector.shape_cast %124 : vector<1x8x32xf32> to vector<8x32xf32>
      %126 = vector.shape_cast %121 : vector<8x32xf32> to vector<1x8x32xf32>
      tpu.vector_store %arg5[%123, %c0_38, %c0_39], %126 {strides = array<i32>} : memref<16x8x64xf32, #tpu.memory_space<vmem>>, vector<1x8x32xf32>,
      %c40_i32 = arith.constant 40 : i32
      %127 = arith.addi %26, %c40_i32 : i32
      %128 = tpu.assume_multiple %127, 8 : i32
      %129 = arith.index_cast %128 : i32 to index
      %c0_40 = arith.constant 0 : index
      %130 = vector.load %arg6[%129, %c0_40] : memref<128x256xf32, #tpu.memory_space<vmem>>, vector<8x256xf32>
      %131 = vector.extract_strided_slice %130 {offsets = [0, 32], sizes = [8, 32], strides = [1, 1]} : vector<8x256xf32> to vector<8x32xf32>
      %132 = vector.extract_strided_slice %130 {offsets = [0, 96], sizes = [8, 32], strides = [1, 1]} : vector<8x256xf32> to vector<8x32xf32>
      %133 = vector.extract_strided_slice %130 {offsets = [0, 160], sizes = [8, 32], strides = [1, 1]} : vector<8x256xf32> to vector<8x32xf32>
      %134 = vector.extract_strided_slice %130 {offsets = [0, 224], sizes = [8, 32], strides = [1, 1]} : vector<8x256xf32> to vector<8x32xf32>
      %135 = arith.subf %97, %133 : vector<8x32xf32>
      %136 = arith.mulf %135, %131 : vector<8x32xf32>
      %137 = arith.addf %136, %133 : vector<8x32xf32>
      %138 = math.tanh %137 : vector<8x32xf32>
      %139 = arith.subf %138, %134 : vector<8x32xf32>
      %140 = arith.mulf %139, %132 : vector<8x32xf32>
      %141 = arith.addf %140, %134 : vector<8x32xf32>
      %c5_i32 = arith.constant 5 : i32
      %142 = arith.addi %23, %c5_i32 : i32
      %143 = arith.index_cast %142 : i32 to index
      %c0_41 = arith.constant 0 : index
      %c32_42 = arith.constant 32 : index
      %144 = vector.load %arg5[%143, %c0_41, %c32_42] : memref<16x8x64xf32, #tpu.memory_space<vmem>>, vector<1x8x32xf32>
      %145 = vector.shape_cast %144 : vector<1x8x32xf32> to vector<8x32xf32>
      %146 = vector.shape_cast %141 : vector<8x32xf32> to vector<1x8x32xf32>
      tpu.vector_store %arg5[%143, %c0_41, %c32_42], %146 {strides = array<i32>} : memref<16x8x64xf32, #tpu.memory_space<vmem>>, vector<1x8x32xf32>,
      %c24_i32 = arith.constant 24 : i32
      %147 = arith.addi %24, %c24_i32 : i32
      %148 = tpu.assume_multiple %147, 8 : i32
      %149 = arith.index_cast %148 : i32 to index
      %c0_43 = arith.constant 0 : index
      %150 = vector.load %arg6[%149, %c0_43] : memref<128x256xf32, #tpu.memory_space<vmem>>, vector<8x256xf32>
      %151 = vector.extract_strided_slice %150 {offsets = [0, 0], sizes = [8, 32], strides = [1, 1]} : vector<8x256xf32> to vector<8x32xf32>
      %152 = vector.extract_strided_slice %150 {offsets = [0, 64], sizes = [8, 32], strides = [1, 1]} : vector<8x256xf32> to vector<8x32xf32>
      %153 = vector.extract_strided_slice %150 {offsets = [0, 128], sizes = [8, 32], strides = [1, 1]} : vector<8x256xf32> to vector<8x32xf32>
      %154 = vector.extract_strided_slice %150 {offsets = [0, 192], sizes = [8, 32], strides = [1, 1]} : vector<8x256xf32> to vector<8x32xf32>
      %155 = arith.subf %117, %153 : vector<8x32xf32>
      %156 = arith.mulf %155, %151 : vector<8x32xf32>
      %157 = arith.addf %156, %153 : vector<8x32xf32>
      %158 = math.tanh %157 : vector<8x32xf32>
      %159 = arith.subf %158, %154 : vector<8x32xf32>
      %160 = arith.mulf %159, %152 : vector<8x32xf32>
      %161 = arith.addf %160, %154 : vector<8x32xf32>
      %c3_i32 = arith.constant 3 : i32
      %162 = arith.addi %21, %c3_i32 : i32
      %163 = arith.index_cast %162 : i32 to index
      %c0_44 = arith.constant 0 : index
      %c0_45 = arith.constant 0 : index
      %164 = vector.load %arg5[%163, %c0_44, %c0_45] : memref<16x8x64xf32, #tpu.memory_space<vmem>>, vector<1x8x32xf32>
      %165 = vector.shape_cast %164 : vector<1x8x32xf32> to vector<8x32xf32>
      %166 = vector.shape_cast %161 : vector<8x32xf32> to vector<1x8x32xf32>
      tpu.vector_store %arg5[%163, %c0_44, %c0_45], %166 {strides = array<i32>} : memref<16x8x64xf32, #tpu.memory_space<vmem>>, vector<1x8x32xf32>,
      %c32_i32 = arith.constant 32 : i32
      %167 = arith.addi %26, %c32_i32 : i32
      %168 = tpu.assume_multiple %167, 8 : i32
      %169 = arith.index_cast %168 : i32 to index
      %c0_46 = arith.constant 0 : index
      %170 = vector.load %arg6[%169, %c0_46] : memref<128x256xf32, #tpu.memory_space<vmem>>, vector<8x256xf32>
      %171 = vector.extract_strided_slice %170 {offsets = [0, 32], sizes = [8, 32], strides = [1, 1]} : vector<8x256xf32> to vector<8x32xf32>
      %172 = vector.extract_strided_slice %170 {offsets = [0, 96], sizes = [8, 32], strides = [1, 1]} : vector<8x256xf32> to vector<8x32xf32>
      %173 = vector.extract_strided_slice %170 {offsets = [0, 160], sizes = [8, 32], strides = [1, 1]} : vector<8x256xf32> to vector<8x32xf32>
      %174 = vector.extract_strided_slice %170 {offsets = [0, 224], sizes = [8, 32], strides = [1, 1]} : vector<8x256xf32> to vector<8x32xf32>
      %175 = arith.subf %137, %173 : vector<8x32xf32>
      %176 = arith.mulf %175, %171 : vector<8x32xf32>
      %177 = arith.addf %176, %173 : vector<8x32xf32>
      %178 = math.tanh %177 : vector<8x32xf32>
      %179 = arith.subf %178, %174 : vector<8x32xf32>
      %180 = arith.mulf %179, %172 : vector<8x32xf32>
      %181 = arith.addf %180, %174 : vector<8x32xf32>
      %c4_i32 = arith.constant 4 : i32
      %182 = arith.addi %23, %c4_i32 : i32
      %183 = arith.index_cast %182 : i32 to index
      %c0_47 = arith.constant 0 : index
      %c32_48 = arith.constant 32 : index
      %184 = vector.load %arg5[%183, %c0_47, %c32_48] : memref<16x8x64xf32, #tpu.memory_space<vmem>>, vector<1x8x32xf32>
      %185 = vector.shape_cast %184 : vector<1x8x32xf32> to vector<8x32xf32>
      %186 = vector.shape_cast %181 : vector<8x32xf32> to vector<1x8x32xf32>
      tpu.vector_store %arg5[%183, %c0_47, %c32_48], %186 {strides = array<i32>} : memref<16x8x64xf32, #tpu.memory_space<vmem>>, vector<1x8x32xf32>,
      %c32_i32_49 = arith.constant 32 : i32
      %187 = arith.addi %24, %c32_i32_49 : i32
      %188 = tpu.assume_multiple %187, 8 : i32
      %189 = arith.index_cast %188 : i32 to index
      %c0_50 = arith.constant 0 : index
      %190 = vector.load %arg6[%189, %c0_50] : memref<128x256xf32, #tpu.memory_space<vmem>>, vector<8x256xf32>
      %191 = vector.extract_strided_slice %190 {offsets = [0, 0], sizes = [8, 32], strides = [1, 1]} : vector<8x256xf32> to vector<8x32xf32>
      %192 = vector.extract_strided_slice %190 {offsets = [0, 64], sizes = [8, 32], strides = [1, 1]} : vector<8x256xf32> to vector<8x32xf32>
      %193 = vector.extract_strided_slice %190 {offsets = [0, 128], sizes = [8, 32], strides = [1, 1]} : vector<8x256xf32> to vector<8x32xf32>
      %194 = vector.extract_strided_slice %190 {offsets = [0, 192], sizes = [8, 32], strides = [1, 1]} : vector<8x256xf32> to vector<8x32xf32>
      %195 = arith.subf %157, %193 : vector<8x32xf32>
      %196 = arith.mulf %195, %191 : vector<8x32xf32>
      %197 = arith.addf %196, %193 : vector<8x32xf32>
      %198 = math.tanh %197 : vector<8x32xf32>
      %199 = arith.subf %198, %194 : vector<8x32xf32>
      %200 = arith.mulf %199, %192 : vector<8x32xf32>
      %201 = arith.addf %200, %194 : vector<8x32xf32>
      %c4_i32_51 = arith.constant 4 : i32
      %202 = arith.addi %21, %c4_i32_51 : i32
      %203 = arith.index_cast %202 : i32 to index
      %c0_52 = arith.constant 0 : index
      %c0_53 = arith.constant 0 : index
      %204 = vector.load %arg5[%203, %c0_52, %c0_53] : memref<16x8x64xf32, #tpu.memory_space<vmem>>, vector<1x8x32xf32>
      %205 = vector.shape_cast %204 : vector<1x8x32xf32> to vector<8x32xf32>
      %206 = vector.shape_cast %201 : vector<8x32xf32> to vector<1x8x32xf32>
      tpu.vector_store %arg5[%203, %c0_52, %c0_53], %206 {strides = array<i32>} : memref<16x8x64xf32, #tpu.memory_space<vmem>>, vector<1x8x32xf32>,
      %c24_i32_54 = arith.constant 24 : i32
      %207 = arith.addi %26, %c24_i32_54 : i32
      %208 = tpu.assume_multiple %207, 8 : i32
      %209 = arith.index_cast %208 : i32 to index
      %c0_55 = arith.constant 0 : index
      %210 = vector.load %arg6[%209, %c0_55] : memref<128x256xf32, #tpu.memory_space<vmem>>, vector<8x256xf32>
      %211 = vector.extract_strided_slice %210 {offsets = [0, 32], sizes = [8, 32], strides = [1, 1]} : vector<8x256xf32> to vector<8x32xf32>
      %212 = vector.extract_strided_slice %210 {offsets = [0, 96], sizes = [8, 32], strides = [1, 1]} : vector<8x256xf32> to vector<8x32xf32>
      %213 = vector.extract_strided_slice %210 {offsets = [0, 160], sizes = [8, 32], strides = [1, 1]} : vector<8x256xf32> to vector<8x32xf32>
      %214 = vector.extract_strided_slice %210 {offsets = [0, 224], sizes = [8, 32], strides = [1, 1]} : vector<8x256xf32> to vector<8x32xf32>
      %215 = arith.subf %177, %213 : vector<8x32xf32>
      %216 = arith.mulf %215, %211 : vector<8x32xf32>
      %217 = arith.addf %216, %213 : vector<8x32xf32>
      %218 = math.tanh %217 : vector<8x32xf32>
      %219 = arith.subf %218, %214 : vector<8x32xf32>
      %220 = arith.mulf %219, %212 : vector<8x32xf32>
      %221 = arith.addf %220, %214 : vector<8x32xf32>
      %c3_i32_56 = arith.constant 3 : i32
      %222 = arith.addi %23, %c3_i32_56 : i32
      %223 = arith.index_cast %222 : i32 to index
      %c0_57 = arith.constant 0 : index
      %c32_58 = arith.constant 32 : index
      %224 = vector.load %arg5[%223, %c0_57, %c32_58] : memref<16x8x64xf32, #tpu.memory_space<vmem>>, vector<1x8x32xf32>
      %225 = vector.shape_cast %224 : vector<1x8x32xf32> to vector<8x32xf32>
      %226 = vector.shape_cast %221 : vector<8x32xf32> to vector<1x8x32xf32>
      tpu.vector_store %arg5[%223, %c0_57, %c32_58], %226 {strides = array<i32>} : memref<16x8x64xf32, #tpu.memory_space<vmem>>, vector<1x8x32xf32>,
      %c40_i32_59 = arith.constant 40 : i32
      %227 = arith.addi %24, %c40_i32_59 : i32
      %228 = tpu.assume_multiple %227, 8 : i32
      %229 = arith.index_cast %228 : i32 to index
      %c0_60 = arith.constant 0 : index
      %230 = vector.load %arg6[%229, %c0_60] : memref<128x256xf32, #tpu.memory_space<vmem>>, vector<8x256xf32>
      %231 = vector.extract_strided_slice %230 {offsets = [0, 0], sizes = [8, 32], strides = [1, 1]} : vector<8x256xf32> to vector<8x32xf32>
      %232 = vector.extract_strided_slice %230 {offsets = [0, 64], sizes = [8, 32], strides = [1, 1]} : vector<8x256xf32> to vector<8x32xf32>
      %233 = vector.extract_strided_slice %230 {offsets = [0, 128], sizes = [8, 32], strides = [1, 1]} : vector<8x256xf32> to vector<8x32xf32>
      %234 = vector.extract_strided_slice %230 {offsets = [0, 192], sizes = [8, 32], strides = [1, 1]} : vector<8x256xf32> to vector<8x32xf32>
      %235 = arith.subf %197, %233 : vector<8x32xf32>
      %236 = arith.mulf %235, %231 : vector<8x32xf32>
      %237 = arith.addf %236, %233 : vector<8x32xf32>
      %238 = math.tanh %237 : vector<8x32xf32>
      %239 = arith.subf %238, %234 : vector<8x32xf32>
      %240 = arith.mulf %239, %232 : vector<8x32xf32>
      %241 = arith.addf %240, %234 : vector<8x32xf32>
      %c5_i32_61 = arith.constant 5 : i32
      %242 = arith.addi %21, %c5_i32_61 : i32
      %243 = arith.index_cast %242 : i32 to index
      %c0_62 = arith.constant 0 : index
      %c0_63 = arith.constant 0 : index
      %244 = vector.load %arg5[%243, %c0_62, %c0_63] : memref<16x8x64xf32, #tpu.memory_space<vmem>>, vector<1x8x32xf32>
      %245 = vector.shape_cast %244 : vector<1x8x32xf32> to vector<8x32xf32>
      %246 = vector.shape_cast %241 : vector<8x32xf32> to vector<1x8x32xf32>
      tpu.vector_store %arg5[%243, %c0_62, %c0_63], %246 {strides = array<i32>} : memref<16x8x64xf32, #tpu.memory_space<vmem>>, vector<1x8x32xf32>,
      %c16_i32_64 = arith.constant 16 : i32
      %247 = arith.addi %26, %c16_i32_64 : i32
      %248 = tpu.assume_multiple %247, 8 : i32
      %249 = arith.index_cast %248 : i32 to index
      %c0_65 = arith.constant 0 : index
      %250 = vector.load %arg6[%249, %c0_65] : memref<128x256xf32, #tpu.memory_space<vmem>>, vector<8x256xf32>
      %251 = vector.extract_strided_slice %250 {offsets = [0, 32], sizes = [8, 32], strides = [1, 1]} : vector<8x256xf32> to vector<8x32xf32>
      %252 = vector.extract_strided_slice %250 {offsets = [0, 96], sizes = [8, 32], strides = [1, 1]} : vector<8x256xf32> to vector<8x32xf32>
      %253 = vector.extract_strided_slice %250 {offsets = [0, 160], sizes = [8, 32], strides = [1, 1]} : vector<8x256xf32> to vector<8x32xf32>
      %254 = vector.extract_strided_slice %250 {offsets = [0, 224], sizes = [8, 32], strides = [1, 1]} : vector<8x256xf32> to vector<8x32xf32>
      %255 = arith.subf %217, %253 : vector<8x32xf32>
      %256 = arith.mulf %255, %251 : vector<8x32xf32>
      %257 = arith.addf %256, %253 : vector<8x32xf32>
      %258 = math.tanh %257 : vector<8x32xf32>
      %259 = arith.subf %258, %254 : vector<8x32xf32>
      %260 = arith.mulf %259, %252 : vector<8x32xf32>
      %261 = arith.addf %260, %254 : vector<8x32xf32>
      %c2_i32_66 = arith.constant 2 : i32
      %262 = arith.addi %23, %c2_i32_66 : i32
      %263 = arith.index_cast %262 : i32 to index
      %c0_67 = arith.constant 0 : index
      %c32_68 = arith.constant 32 : index
      %264 = vector.load %arg5[%263, %c0_67, %c32_68] : memref<16x8x64xf32, #tpu.memory_space<vmem>>, vector<1x8x32xf32>
      %265 = vector.shape_cast %264 : vector<1x8x32xf32> to vector<8x32xf32>
      %266 = vector.shape_cast %261 : vector<8x32xf32> to vector<1x8x32xf32>
      tpu.vector_store %arg5[%263, %c0_67, %c32_68], %266 {strides = array<i32>} : memref<16x8x64xf32, #tpu.memory_space<vmem>>, vector<1x8x32xf32>,
      %c48_i32_69 = arith.constant 48 : i32
      %267 = arith.addi %24, %c48_i32_69 : i32
      %268 = tpu.assume_multiple %267, 8 : i32
      %269 = arith.index_cast %268 : i32 to index
      %c0_70 = arith.constant 0 : index
      %270 = vector.load %arg6[%269, %c0_70] : memref<128x256xf32, #tpu.memory_space<vmem>>, vector<8x256xf32>
      %271 = vector.extract_strided_slice %270 {offsets = [0, 0], sizes = [8, 32], strides = [1, 1]} : vector<8x256xf32> to vector<8x32xf32>
      %272 = vector.extract_strided_slice %270 {offsets = [0, 64], sizes = [8, 32], strides = [1, 1]} : vector<8x256xf32> to vector<8x32xf32>
      %273 = vector.extract_strided_slice %270 {offsets = [0, 128], sizes = [8, 32], strides = [1, 1]} : vector<8x256xf32> to vector<8x32xf32>
      %274 = vector.extract_strided_slice %270 {offsets = [0, 192], sizes = [8, 32], strides = [1, 1]} : vector<8x256xf32> to vector<8x32xf32>
      %275 = arith.subf %237, %273 : vector<8x32xf32>
      %276 = arith.mulf %275, %271 : vector<8x32xf32>
      %277 = arith.addf %276, %273 : vector<8x32xf32>
      %278 = math.tanh %277 : vector<8x32xf32>
      %279 = arith.subf %278, %274 : vector<8x32xf32>
      %280 = arith.mulf %279, %272 : vector<8x32xf32>
      %281 = arith.addf %280, %274 : vector<8x32xf32>
      %c6_i32_71 = arith.constant 6 : i32
      %282 = arith.addi %21, %c6_i32_71 : i32
      %283 = arith.index_cast %282 : i32 to index
      %c0_72 = arith.constant 0 : index
      %c0_73 = arith.constant 0 : index
      %284 = vector.load %arg5[%283, %c0_72, %c0_73] : memref<16x8x64xf32, #tpu.memory_space<vmem>>, vector<1x8x32xf32>
      %285 = vector.shape_cast %284 : vector<1x8x32xf32> to vector<8x32xf32>
      %286 = vector.shape_cast %281 : vector<8x32xf32> to vector<1x8x32xf32>
      tpu.vector_store %arg5[%283, %c0_72, %c0_73], %286 {strides = array<i32>} : memref<16x8x64xf32, #tpu.memory_space<vmem>>, vector<1x8x32xf32>,
      %c8_i32_74 = arith.constant 8 : i32
      %287 = arith.addi %26, %c8_i32_74 : i32
      %288 = tpu.assume_multiple %287, 8 : i32
      %289 = arith.index_cast %288 : i32 to index
      %c0_75 = arith.constant 0 : index
      %290 = vector.load %arg6[%289, %c0_75] : memref<128x256xf32, #tpu.memory_space<vmem>>, vector<8x256xf32>
      %291 = vector.extract_strided_slice %290 {offsets = [0, 32], sizes = [8, 32], strides = [1, 1]} : vector<8x256xf32> to vector<8x32xf32>
      %292 = vector.extract_strided_slice %290 {offsets = [0, 96], sizes = [8, 32], strides = [1, 1]} : vector<8x256xf32> to vector<8x32xf32>
      %293 = vector.extract_strided_slice %290 {offsets = [0, 160], sizes = [8, 32], strides = [1, 1]} : vector<8x256xf32> to vector<8x32xf32>
      %294 = vector.extract_strided_slice %290 {offsets = [0, 224], sizes = [8, 32], strides = [1, 1]} : vector<8x256xf32> to vector<8x32xf32>
      %295 = arith.subf %257, %293 : vector<8x32xf32>
      %296 = arith.mulf %295, %291 : vector<8x32xf32>
      %297 = arith.addf %296, %293 : vector<8x32xf32>
      %298 = math.tanh %297 : vector<8x32xf32>
      %299 = arith.subf %298, %294 : vector<8x32xf32>
      %300 = arith.mulf %299, %292 : vector<8x32xf32>
      %301 = arith.addf %300, %294 : vector<8x32xf32>
      %c1_i32_76 = arith.constant 1 : i32
      %302 = arith.addi %23, %c1_i32_76 : i32
      %303 = arith.index_cast %302 : i32 to index
      %c0_77 = arith.constant 0 : index
      %c32_78 = arith.constant 32 : index
      %304 = vector.load %arg5[%303, %c0_77, %c32_78] : memref<16x8x64xf32, #tpu.memory_space<vmem>>, vector<1x8x32xf32>
      %305 = vector.shape_cast %304 : vector<1x8x32xf32> to vector<8x32xf32>
      %306 = vector.shape_cast %301 : vector<8x32xf32> to vector<1x8x32xf32>
      tpu.vector_store %arg5[%303, %c0_77, %c32_78], %306 {strides = array<i32>} : memref<16x8x64xf32, #tpu.memory_space<vmem>>, vector<1x8x32xf32>,
      %c56_i32_79 = arith.constant 56 : i32
      %307 = arith.addi %24, %c56_i32_79 : i32
      %308 = tpu.assume_multiple %307, 8 : i32
      %309 = arith.index_cast %308 : i32 to index
      %c0_80 = arith.constant 0 : index
      %310 = vector.load %arg6[%309, %c0_80] : memref<128x256xf32, #tpu.memory_space<vmem>>, vector<8x256xf32>
      %311 = vector.extract_strided_slice %310 {offsets = [0, 0], sizes = [8, 32], strides = [1, 1]} : vector<8x256xf32> to vector<8x32xf32>
      %312 = vector.extract_strided_slice %310 {offsets = [0, 64], sizes = [8, 32], strides = [1, 1]} : vector<8x256xf32> to vector<8x32xf32>
      %313 = vector.extract_strided_slice %310 {offsets = [0, 128], sizes = [8, 32], strides = [1, 1]} : vector<8x256xf32> to vector<8x32xf32>
      %314 = vector.extract_strided_slice %310 {offsets = [0, 192], sizes = [8, 32], strides = [1, 1]} : vector<8x256xf32> to vector<8x32xf32>
      %315 = arith.subf %277, %313 : vector<8x32xf32>
      %316 = arith.mulf %315, %311 : vector<8x32xf32>
      %317 = arith.addf %316, %313 : vector<8x32xf32>
      %318 = math.tanh %317 : vector<8x32xf32>
      %319 = arith.subf %318, %314 : vector<8x32xf32>
      %320 = arith.mulf %319, %312 : vector<8x32xf32>
      %321 = arith.addf %320, %314 : vector<8x32xf32>
      %c7_i32_81 = arith.constant 7 : i32
      %322 = arith.addi %21, %c7_i32_81 : i32
      %323 = arith.index_cast %322 : i32 to index
      %c0_82 = arith.constant 0 : index
      %c0_83 = arith.constant 0 : index
      %324 = vector.load %arg5[%323, %c0_82, %c0_83] : memref<16x8x64xf32, #tpu.memory_space<vmem>>, vector<1x8x32xf32>
      %325 = vector.shape_cast %324 : vector<1x8x32xf32> to vector<8x32xf32>
      %326 = vector.shape_cast %321 : vector<8x32xf32> to vector<1x8x32xf32>
      tpu.vector_store %arg5[%323, %c0_82, %c0_83], %326 {strides = array<i32>} : memref<16x8x64xf32, #tpu.memory_space<vmem>>, vector<1x8x32xf32>,
      %c0_i32_84 = arith.constant 0 : i32
      %327 = arith.addi %26, %c0_i32_84 : i32
      %328 = tpu.assume_multiple %327, 8 : i32
      %329 = arith.index_cast %328 : i32 to index
      %c0_85 = arith.constant 0 : index
      %330 = vector.load %arg6[%329, %c0_85] : memref<128x256xf32, #tpu.memory_space<vmem>>, vector<8x256xf32>
      %331 = vector.extract_strided_slice %330 {offsets = [0, 32], sizes = [8, 32], strides = [1, 1]} : vector<8x256xf32> to vector<8x32xf32>
      %332 = vector.extract_strided_slice %330 {offsets = [0, 96], sizes = [8, 32], strides = [1, 1]} : vector<8x256xf32> to vector<8x32xf32>
      %333 = vector.extract_strided_slice %330 {offsets = [0, 160], sizes = [8, 32], strides = [1, 1]} : vector<8x256xf32> to vector<8x32xf32>
      %334 = vector.extract_strided_slice %330 {offsets = [0, 224], sizes = [8, 32], strides = [1, 1]} : vector<8x256xf32> to vector<8x32xf32>
      %335 = arith.subf %297, %333 : vector<8x32xf32>
      %336 = arith.mulf %335, %331 : vector<8x32xf32>
      %337 = arith.addf %336, %333 : vector<8x32xf32>
      %338 = math.tanh %337 : vector<8x32xf32>
      %339 = arith.subf %338, %334 : vector<8x32xf32>
      %340 = arith.mulf %339, %332 : vector<8x32xf32>
      %341 = arith.addf %340, %334 : vector<8x32xf32>
      %c0_i32_86 = arith.constant 0 : i32
      %342 = arith.addi %23, %c0_i32_86 : i32
      %343 = arith.index_cast %342 : i32 to index
      %c0_87 = arith.constant 0 : index
      %c32_88 = arith.constant 32 : index
      %344 = vector.load %arg5[%343, %c0_87, %c32_88] : memref<16x8x64xf32, #tpu.memory_space<vmem>>, vector<1x8x32xf32>
      %345 = vector.shape_cast %344 : vector<1x8x32xf32> to vector<8x32xf32>
      %346 = vector.shape_cast %341 : vector<8x32xf32> to vector<1x8x32xf32>
      tpu.vector_store %arg5[%343, %c0_87, %c32_88], %346 {strides = array<i32>} : memref<16x8x64xf32, #tpu.memory_space<vmem>>, vector<1x8x32xf32>,
      scf.yield %317, %337 : vector<8x32xf32>, vector<8x32xf32>
    }
    %c2_i32_16 = arith.constant 2 : i32
    return
  }
  func.func @transform_0(%arg0: i32, %arg1: i32) -> (i32, i32, i32) {
    %c0_i32 = arith.constant 0 : i32
    %c0_i32_0 = arith.constant 0 : i32
    %c0_i32_1 = arith.constant 0 : i32
    return %c0_i32, %arg0, %c0_i32_0 : i32, i32, i32
  }
  func.func @transform_1(%arg0: i32, %arg1: i32) -> (i32, i32, i32) {
    %c0_i32 = arith.constant 0 : i32
    %c0_i32_0 = arith.constant 0 : i32
    %c0_i32_1 = arith.constant 0 : i32
    return %arg1, %c0_i32, %c0_i32_0 : i32, i32, i32
  }
  func.func @transform_2(%arg0: i32, %arg1: i32) -> (i32, i32, i32) {
    %c0_i32 = arith.constant 0 : i32
    %c0_i32_0 = arith.constant 0 : i32
    %c0_i32_1 = arith.constant 0 : i32
    return %arg1, %c0_i32, %c0_i32_0 : i32, i32, i32
  }
  func.func @transform_3(%arg0: i32, %arg1: i32) -> (i32, i32, i32) {
    %c0_i32 = arith.constant 0 : i32
    %c0_i32_0 = arith.constant 0 : i32
    %c0_i32_1 = arith.constant 0 : i32
    return %c0_i32, %arg0, %c0_i32_0 : i32, i32, i32
  }
}

</mosaic_0001>

<bundles_post_ra>
// kernel: tpu_custom_call.1
= control target key start
LH: loop header
LB: loop body
LE: loop exit
PB: predicated region body
PF: predicated region fallthrough
CT: control target
= control target key end

     0   :  { %8 = vsyncpa [#allocation4], 0  ;;  %s1631_s0 = inlined_call_operand.hbm [shape: f32[16,8,32], index: 0, kind: input, shape index: {}]   ;;  %s1632_s1 = inlined_call_operand.hbm [shape: bf16[1,32,256], index: 1, kind: input, shape index: {}]   ;;  %s1633_s2 = inlined_call_operand.vmem [shape: f32[1,1,128], index: 2, kind: input, shape index: {}]   ;;  %s1634_s3 = inlined_call_operand.hbm [shape: f32[16,8,64], index: 3, kind: output, shape index: {}]  }
   0x1   :  { %9 = vsyncpa [#allocation7], 0 }
   0x2   :  { %10 = vsyncpa [#allocation5], 0  ;;  %s1350_s12 = smov [#allocation3]   ;;  %s1254_s16 = scalar_lea.hbm %s1631_s0, 2048 }
   0x3   :  { %s16_s13 = sshll.u32 %s1350_s12, 4  ;;  %p1255_p0 = scmp.ne.s32.totalorder %s1631_s0, %s1254_s16  ;;  %s17_s13 = int_to_ptr.vmem [resolvable:$true] %s16_s13 }
   0x4   :  { %p1258_p1 = scmp.lt.u32.totalorder %s1254_s16, %s1631_s0 }
   0x6   :  { %p1260_p2 = pnand %p1258_p1, %p1255_p0 }
   0x8   :  { %1263 = shalt.err (!%p1260_p2)
}
   0x9   :  { %s1264_s21 = scalar_lea.vmem %s17_s13, 2048  ;;  %p1269_p4 = scmp.lt.s32.totalorder %s17_s13, %s17_s13 }
   0xa   :  { %p1265_p3 = scmp.ne.s32.totalorder %s17_s13, %s1264_s21  ;;  %p1270_p5 = scmp.lt.s32.totalorder %s1264_s21, %s1264_s21 }
   0xc   :  { %p1271_p6 = por %p1270_p5, %p1269_p4 }
   0xe   :  { %p1272_p7 = pnand %p1271_p6, %p1265_p3 }
  0x10   :  { %1275 = shalt.err (!%p1272_p7)
}
  0x11   :  { %s1351_s22 = smov 128   ;;  %s1352_s23 = smov 8  }
  0x12   :  { %22 = dma.hbm_to_vmem [thread:$0]  %s1631_s0, 2048, %s17_s13, [#allocation4], %s1351_s22, %s1351_s22, %s1352_s23  }
  0x13   :  { %s1353_s26 = smov [#allocation6]   ;;  %s1276_s30 = scalar_lea.hbm %s1632_s1, 512 }
  0x14   :  { %s28_s27 = sshll.u32 %s1353_s26, 4  ;;  %p1277_p8 = scmp.ne.s32.totalorder %s1632_s1, %s1276_s30  ;;  %s29_s27 = int_to_ptr.vmem [resolvable:$true] %s28_s27 }
  0x15   :  { %p1280_p9 = scmp.lt.u32.totalorder %s1276_s30, %s1632_s1 }
  0x17   :  { %p1282_p10 = pnand %p1280_p9, %p1277_p8 }
  0x19   :  { %1285 = shalt.err (!%p1282_p10)
}
  0x1a   :  { %s1286_s8 = scalar_lea.vmem %s29_s27, 512  ;;  %p1291_p12 = scmp.lt.s32.totalorder %s29_s27, %s29_s27 }
  0x1b   :  { %p1287_p11 = scmp.ne.s32.totalorder %s29_s27, %s1286_s8  ;;  %p1292_p13 = scmp.lt.s32.totalorder %s1286_s8, %s1286_s8 }
  0x1d   :  { %p1293_p0 = por %p1292_p13, %p1291_p12 }
  0x1f   :  { %p1294_p1 = pnand %p1293_p0, %p1287_p11 }
  0x21   :  { %1297 = shalt.err (!%p1294_p1)
}
  0x22   :  { %34 = dma.hbm_to_vmem [thread:$0]  %s1632_s1, 512, %s29_s27, [#allocation7], %s1351_s22, %s1351_s22, %s1352_s23  }
  0x23   :  { %1332 = dma.done.wait [#allocation4], 2048  }
  0x24   :  { %1333 = vsyncadd [#allocation4], 4294965248 }
  0x25   :  { %1334 = dma.done.wait [#allocation7], 512  }
  0x26   :  { %1335 = vsyncadd [#allocation7], 4294966784  ;;  %v1354_v0 = vmov 0   ;;  %v1152_v1 = vld [vmem:[#allocation6 + $0x4] ss:$8 sps:$4 sm:$0xff]   ;;  %vm92_vm0 = vcmask 261120  }
  0x27   :  { %149 = vmatprep.mubr.bf16.mxu0 %v1354_v0  ;;  %189 = vmatprep.mubr.bf16.mxu1 %v1354_v0  ;;  %v1154_v2 = vld [vmem:[#allocation6] ss:$8 sps:$4 sm:$0xff]   ;;  %v1155_v3 = vld [vmem:[#allocation6 + $0x14] ss:$8 sps:$4 sm:$0xff]   ;;  %v1157_v4 = vld [vmem:[#allocation6 + $0x10] ss:$8 sps:$4 sm:$0xff]  }
  0x28   :  { %117 = vmatprep.subr.bf16.mxu0 %v1152_v1  ;;  %1117 = vmatprep.subr.bf16.mxu1 %v1152_v1  ;;  %v44_v5 = vld [vmem:[#allocation3] sm:$0xff]  ;;  %v45_v6 = vld [vmem:[#allocation3 + $0x8] sm:$0xff]  ;;  %v46_v11 = vld [vmem:[#allocation3 + $0x10] sm:$0xff] }
  0x29   :  { %118 = vmatpush1.bf16.msra.mxu0 %v1154_v2  ;;  %1119 = vmatpush1.bf16.msra.mxu1 %v1154_v2  ;;  %v52_v7 = vld [vmem:[#allocation3 + $0x40] sm:$0xff]  ;;  %v53_v8 = vld [vmem:[#allocation3 + $0x48] sm:$0xff]  ;;  %v60_v9 = vpack.c.bf16 %v45_v6, %v44_v5  ;;  %v47_v12 = vld [vmem:[#allocation3 + $0x18] sm:$0xff] }
  0x2a   :  { %119 = vmatprep.subr.bf16.mxu0 %v1155_v3  ;;  %1118 = vmatprep.subr.bf16.mxu1 %v1155_v3  ;;  %v64_v10 = vpack.c.bf16 %v53_v8, %v52_v7  ;;  %v54_v13 = vld [vmem:[#allocation3 + $0x50] sm:$0xff]  ;;  %v55_v14 = vld [vmem:[#allocation3 + $0x58] sm:$0xff]  ;;  %v61_v15 = vpack.c.bf16 %v47_v12, %v46_v11  ;;  %v48_v17 = vld [vmem:[#allocation3 + $0x20] sm:$0xff] }
  0x2b   :  { %v65_v16 = vpack.c.bf16 %v55_v14, %v54_v13  ;;  %v49_v18 = vld [vmem:[#allocation3 + $0x28] sm:$0xff]  ;;  %v56_v19 = vld [vmem:[#allocation3 + $0x60] sm:$0xff]  ;;  %v50_v23 = vld [vmem:[#allocation3 + $0x30] sm:$0xff] }
  0x2c   :  { %v57_v20 = vld [vmem:[#allocation3 + $0x68] sm:$0xff]  ;;  %v62_v21 = vpack.c.bf16 %v49_v18, %v48_v17  ;;  %v51_v24 = vld [vmem:[#allocation3 + $0x38] sm:$0xff]  ;;  %v58_v25 = vld [vmem:[#allocation3 + $0x70] sm:$0xff] }
  0x2d   :  { %120 = vmatpush1.bf16.msra.mxu0 %v1157_v4  ;;  %1120 = vmatpush1.bf16.msra.mxu1 %v1157_v4  ;;  %v66_v22 = vpack.c.bf16 %v57_v20, %v56_v19  ;;  %v59_v26 = vld [vmem:[#allocation3 + $0x78] sm:$0xff]  ;;  %v63_v27 = vpack.c.bf16 %v51_v24, %v50_v23  ;;  %v1418_v29 = vld [vmem:[%s1633_s2] ss:$0 sm:$0xff]  ;;  %s1440_s2 = smov 0  }
  0x2e   :  { %v67_v28 = vpack.c.bf16 %v59_v26, %v58_v25 }
  0x30   :  { %980 = vmatmul.mubr.msk.bf16.vlgmr.msra.gmra.mrb[0].mxu0 %vm92_vm0, %v60_v9  ;;  %984 = vmatmul.mubr.msk.bf16.vlgmr.msra.gmra.mrb[0].mxu1 %vm92_vm0, %v64_v10 }
  0x31   :  { %159 = vmatprep.mubr.bf16.mxu0 %v1354_v0  ;;  %199 = vmatprep.mubr.bf16.mxu1 %v1354_v0 }
  0x38   :  { %981 = vmatmul.mubr.msk.bf16.gmra.mrb[4].mxu0 %vm92_vm0, %v61_v15  ;;  %985 = vmatmul.mubr.msk.bf16.gmra.mrb[4].mxu1 %vm92_vm0, %v65_v16 }
  0x39   :  { %169 = vmatprep.mubr.bf16.mxu0 %v1354_v0  ;;  %209 = vmatprep.mubr.bf16.mxu1 %v1354_v0 }
  0x40   :  { %982 = vmatmul.mubr.msk.bf16.gmra.mrb[8].mxu0 %vm92_vm0, %v62_v21  ;;  %986 = vmatmul.mubr.msk.bf16.gmra.mrb[8].mxu1 %vm92_vm0, %v66_v22 }
  0x41   :  { %179 = vmatprep.mubr.bf16.mxu0 %v1354_v0  ;;  %219 = vmatprep.mubr.bf16.mxu1 %v1354_v0 }
  0x48   :  { %983 = vmatmul.mubr.msk.bf16.gmra.mrb[12].mxu0 %vm92_vm0, %v63_v27  ;;  %987 = vmatmul.mubr.msk.bf16.gmra.mrb[12].mxu1 %vm92_vm0, %v67_v28 }
 0x103   :  { %v151_v30 = vpop.f32.mrb[0].mxu0  ;;  %v191_v31 = vpop.f32.mrb[0].mxu1 }
 0x104   :  { %v285_v32 = vadd.f32 %v1418_v29, %v151_v30  ;;  %v293_v33 = vadd.f32 %v1418_v29, %v191_v31  ;;  %v153_v34 = vpop.f32.mrb[1].mxu0  ;;  %v193_v35 = vpop.f32.mrb[1].mxu1 }
 0x105   :  { %231 = vst [vmem:[#allocation2 + $0x8] sm:$0xff] %v153_v34  ;;  %247 = vst [vmem:[#allocation2 + $0x88] sm:$0xff] %v193_v35  ;;  %v155_v36 = vpop.f32.mrb[2].mxu0  ;;  %v195_v37 = vpop.f32.mrb[2].mxu1 }
 0x106   :  { %v989_v38 = vmul.f32 -1.442695, %v285_v32  ;;  %v997_v39 = vmul.f32 -1.442695, %v293_v33  ;;  %v286_v40 = vadd.f32 %v1418_v29, %v155_v36  ;;  %v294_v41 = vadd.f32 %v1418_v29, %v195_v37  ;;  %v157_v42 = vpop.f32.mrb[3].mxu0  ;;  %v197_v43 = vpop.f32.mrb[3].mxu1 }
 0x107   :  { %233 = vst [vmem:[#allocation2 + $0x18] sm:$0xff] %v157_v42  ;;  %249 = vst [vmem:[#allocation2 + $0x98] sm:$0xff] %v197_v43 }
 0x108   :  { %1158 = vpow2.f32 %v989_v38  ;;  %v990_v44 = vmul.f32 -1.442695, %v286_v40  ;;  %v998_v45 = vmul.f32 -1.442695, %v294_v41 }
 0x109   :  { %1160 = vpow2.f32 %v997_v39 }
 0x10a   :  { %1162 = vpow2.f32 %v990_v44 }
 0x10b   :  { %1164 = vpow2.f32 %v998_v45  ;;  %v161_v46 = vpop.f32.mrb[4].mxu0  ;;  %v201_v47 = vpop.f32.mrb[4].mxu1 }
 0x10c   :  { %v287_v48 = vadd.f32 %v1418_v29, %v161_v46  ;;  %v295_v49 = vadd.f32 %v1418_v29, %v201_v47  ;;  %v163_v50 = vpop.f32.mrb[5].mxu0  ;;  %v203_v51 = vpop.f32.mrb[5].mxu1 }
 0x10d   :  { %235 = vst [vmem:[#allocation2 + $0x28] sm:$0xff] %v163_v50  ;;  %251 = vst [vmem:[#allocation2 + $0xa8] sm:$0xff] %v203_v51  ;;  %v165_v52 = vpop.f32.mrb[6].mxu0  ;;  %v205_v53 = vpop.f32.mrb[6].mxu1 }
 0x10e   :  { %v991_v54 = vmul.f32 -1.442695, %v287_v48  ;;  %v999_v55 = vmul.f32 -1.442695, %v295_v49  ;;  %v288_v56 = vadd.f32 %v1418_v29, %v165_v52  ;;  %v296_v57 = vadd.f32 %v1418_v29, %v205_v53  ;;  %v167_v58 = vpop.f32.mrb[7].mxu0  ;;  %v207_v59 = vpop.f32.mrb[7].mxu1 }
 0x10f   :  { %237 = vst [vmem:[#allocation2 + $0x38] sm:$0xff] %v167_v58  ;;  %253 = vst [vmem:[#allocation2 + $0xb8] sm:$0xff] %v207_v59 }
 0x110   :  { %1166 = vpow2.f32 %v991_v54  ;;  %v992_v60 = vmul.f32 -1.442695, %v288_v56  ;;  %v1000_v61 = vmul.f32 -1.442695, %v296_v57 }
 0x111   :  { %1168 = vpow2.f32 %v999_v55 }
 0x112   :  { %v1159_v62 = vpop.eup %1158  ;;  %1170 = vpow2.f32 %v992_v60 }
 0x113   :  { %v1161_v63 = vpop.eup %1160  ;;  %v349_v0 = vadd.f32 1.0, %v1159_v62  ;;  %1172 = vpow2.f32 %v1000_v61  ;;  %v171_v1 = vpop.f32.mrb[8].mxu0 }
 0x114   :  { %v211_v2 = vpop.f32.mrb[8].mxu1  ;;  %v1163_v3 = vpop.eup %1162  ;;  %v357_v4 = vadd.f32 1.0, %v1161_v63  ;;  %v289_v5 = vadd.f32 %v1418_v29, %v171_v1 }
 0x115   :  { %v297_v6 = vadd.f32 %v1418_v29, %v211_v2  ;;  %v173_v7 = vpop.f32.mrb[9].mxu0  ;;  %v213_v8 = vpop.f32.mrb[9].mxu1  ;;  %1174 = vrcp.f32 %v349_v0  ;;  %v350_v10 = vadd.f32 1.0, %v1163_v3 }
 0x116   :  { %v1165_v9 = vpop.eup %1164  ;;  %239 = vst [vmem:[#allocation2 + $0x48] sm:$0xff] %v173_v7  ;;  %255 = vst [vmem:[#allocation2 + $0xc8] sm:$0xff] %v213_v8  ;;  %v175_v11 = vpop.f32.mrb[10].mxu0  ;;  %1176 = vrcp.f32 %v357_v4  ;;  %v993_v14 = vmul.f32 -1.442695, %v289_v5 }
 0x117   :  { %v215_v12 = vpop.f32.mrb[10].mxu1  ;;  %v358_v13 = vadd.f32 1.0, %v1165_v9  ;;  %v1001_v15 = vmul.f32 -1.442695, %v297_v6  ;;  %v177_v16 = vpop.f32.mrb[11].mxu0  ;;  %1178 = vrcp.f32 %v350_v10  ;;  %v290_v17 = vadd.f32 %v1418_v29, %v175_v11 }
 0x118   :  { %v298_v18 = vadd.f32 %v1418_v29, %v215_v12  ;;  %241 = vst [vmem:[#allocation2 + $0x58] sm:$0xff] %v177_v16  ;;  %v217_v19 = vpop.f32.mrb[11].mxu1 }
 0x119   :  { %1180 = vrcp.f32 %v358_v13  ;;  %257 = vst [vmem:[#allocation2 + $0xd8] sm:$0xff] %v217_v19  ;;  %v994_v20 = vmul.f32 -1.442695, %v290_v17 }
 0x11a   :  { %1182 = vpow2.f32 %v993_v14  ;;  %v1002_v21 = vmul.f32 -1.442695, %v298_v18  ;;  %v1167_v22 = vpop.eup %1166  ;;  %v1436_v14 = vmov 0.0  }
 0x11b   :  { %1184 = vpow2.f32 %v1001_v15  ;;  %v1169_v23 = vpop.eup %1168  ;;  %v351_v24 = vadd.f32 1.0, %v1167_v22  ;;  %v181_v25 = vpop.f32.mrb[12].mxu0  ;;  %v1438_v15 = vmov 0.0  }
 0x11c   :  { %1186 = vpow2.f32 %v994_v20  ;;  %v221_v26 = vpop.f32.mrb[12].mxu1  ;;  %v1171_v27 = vpop.eup %1170  ;;  %v359_v28 = vadd.f32 1.0, %v1169_v23  ;;  %v291_v30 = vadd.f32 %v1418_v29, %v181_v25 }
 0x11d   :  { %1188 = vpow2.f32 %v1002_v21  ;;  %v299_v31 = vadd.f32 %v1418_v29, %v221_v26  ;;  %v183_v32 = vpop.f32.mrb[13].mxu0  ;;  %v223_v33 = vpop.f32.mrb[13].mxu1  ;;  %v352_v35 = vadd.f32 1.0, %v1171_v27 }
 0x11e   :  { %v1173_v34 = vpop.eup %1172  ;;  %1190 = vrcp.f32 %v351_v24  ;;  %243 = vst [vmem:[#allocation2 + $0x68] sm:$0xff] %v183_v32  ;;  %259 = vst [vmem:[#allocation2 + $0xe8] sm:$0xff] %v223_v33  ;;  %v185_v36 = vpop.f32.mrb[14].mxu0  ;;  %v995_v39 = vmul.f32 -1.442695, %v291_v30 }
 0x11f   :  { %v225_v37 = vpop.f32.mrb[14].mxu1  ;;  %1192 = vrcp.f32 %v359_v28  ;;  %v360_v38 = vadd.f32 1.0, %v1173_v34  ;;  %v1003_v40 = vmul.f32 -1.442695, %v299_v31  ;;  %v187_v41 = vpop.f32.mrb[15].mxu0  ;;  %v292_v43 = vadd.f32 %v1418_v29, %v185_v36 }
 0x120   :  { %v1175_v42 = vpop.eup %1174  ;;  %1194 = vrcp.f32 %v352_v35  ;;  %v300_v44 = vadd.f32 %v1418_v29, %v225_v37  ;;  %245 = vst [vmem:[#allocation2 + $0x78] sm:$0xff] %v187_v41  ;;  %v227_v45 = vpop.f32.mrb[15].mxu1 }
 0x121   :  { %v1177_v46 = vpop.eup %1176  ;;  %397 = vst [vmem:[#allocation2] sm:$0xff] %v1175_v42  ;;  %1196 = vrcp.f32 %v360_v38  ;;  %261 = vst [vmem:[#allocation2 + $0xf8] sm:$0xff] %v227_v45  ;;  %v996_v48 = vmul.f32 -1.442695, %v292_v43 }
 0x122   :  { %v1179_v47 = vpop.eup %1178  ;;  %405 = vst [vmem:[#allocation2 + $0x80] sm:$0xff] %v1177_v46  ;;  %1198 = vpow2.f32 %v995_v39  ;;  %v1004_v49 = vmul.f32 -1.442695, %v300_v44 }
 0x123   :  { %v1181_v50 = vpop.eup %1180  ;;  %398 = vst [vmem:[#allocation2 + $0x10] sm:$0xff] %v1179_v47  ;;  %1200 = vpow2.f32 %v1003_v40 }
 0x124   :  { %v1183_v51 = vpop.eup %1182  ;;  %406 = vst [vmem:[#allocation2 + $0x90] sm:$0xff] %v1181_v50  ;;  %1202 = vpow2.f32 %v996_v48 }
 0x125   :  { %v1185_v52 = vpop.eup %1184  ;;  %v353_v53 = vadd.f32 1.0, %v1183_v51  ;;  %1204 = vpow2.f32 %v1004_v49 }
 0x126   :  { %v1187_v29 = vpop.eup %1186  ;;  %v361_v54 = vadd.f32 1.0, %v1185_v52 }
 0x127   :  { %v1189_v55 = vpop.eup %1188  ;;  %1206 = vrcp.f32 %v353_v53  ;;  %v354_v56 = vadd.f32 1.0, %v1187_v29 }
 0x128   :  { %v1191_v57 = vpop.eup %1190  ;;  %1208 = vrcp.f32 %v361_v54  ;;  %v362_v58 = vadd.f32 1.0, %v1189_v55 }
 0x129   :  { %v1193_v59 = vpop.eup %1192  ;;  %399 = vst [vmem:[#allocation2 + $0x20] sm:$0xff] %v1191_v57  ;;  %1210 = vrcp.f32 %v354_v56 }
 0x12a   :  { %v1195_v60 = vpop.eup %1194  ;;  %407 = vst [vmem:[#allocation2 + $0xa0] sm:$0xff] %v1193_v59  ;;  %1212 = vrcp.f32 %v362_v58 }
 0x12b   :  { %v1197_v61 = vpop.eup %1196  ;;  %400 = vst [vmem:[#allocation2 + $0x30] sm:$0xff] %v1195_v60 }
 0x12c   :  { %v1199_v62 = vpop.eup %1198  ;;  %408 = vst [vmem:[#allocation2 + $0xb0] sm:$0xff] %v1197_v61 }
 0x12d   :  { %v1201_v63 = vpop.eup %1200  ;;  %v355_v0 = vadd.f32 1.0, %v1199_v62 }
 0x12e   :  { %v1203_v1 = vpop.eup %1202  ;;  %v363_v2 = vadd.f32 1.0, %v1201_v63 }
 0x12f   :  { %v1205_v3 = vpop.eup %1204  ;;  %1214 = vrcp.f32 %v355_v0  ;;  %v356_v4 = vadd.f32 1.0, %v1203_v1 }
 0x130   :  { %1216 = vrcp.f32 %v363_v2  ;;  %v364_v5 = vadd.f32 1.0, %v1205_v3 }
 0x131   :  { %v1207_v6 = vpop.eup %1206  ;;  %1218 = vrcp.f32 %v356_v4 }
 0x132   :  { %v1209_v7 = vpop.eup %1208  ;;  %401 = vst [vmem:[#allocation2 + $0x40] sm:$0xff] %v1207_v6  ;;  %1220 = vrcp.f32 %v364_v5 }
 0x133   :  { %v1211_v8 = vpop.eup %1210  ;;  %409 = vst [vmem:[#allocation2 + $0xc0] sm:$0xff] %v1209_v7 }
 0x134   :  { %v1213_v9 = vpop.eup %1212  ;;  %402 = vst [vmem:[#allocation2 + $0x50] sm:$0xff] %v1211_v8 }
 0x135   :  { %410 = vst [vmem:[#allocation2 + $0xd0] sm:$0xff] %v1213_v9 }
 0x139   :  { %v1215_v10 = vpop.eup %1214 }
 0x13a   :  { %v1217_v11 = vpop.eup %1216  ;;  %403 = vst [vmem:[#allocation2 + $0x60] sm:$0xff] %v1215_v10 }
 0x13b   :  { %v1219_v12 = vpop.eup %1218  ;;  %411 = vst [vmem:[#allocation2 + $0xe0] sm:$0xff] %v1217_v11 }
 0x13c   :  { %v1221_v13 = vpop.eup %1220  ;;  %404 = vst [vmem:[#allocation2 + $0x70] sm:$0xff] %v1219_v12 }
 0x13d   :  { %412 = vst [vmem:[#allocation2 + $0xf0] sm:$0xff] %v1221_v13 }
 0x13e LB: > { %s1448_s11 = sshll.u32 %s1348_s2, 6  ;;  %s422_s12 = ssub.s32 1, %s1348_s2  ;;  %vm477_vm1 = vcmask 523520   ;;  %s1348_s2 = sphi %s1440_s2, %s418_s2   ;;  %v1344_v15 = vphi %v1438_v15, %v1635_v15   ;;  %v1340_v14 = vphi %v1436_v14, %v1545_v14  }
 0x13f   : > { %s426_s13 = sshra.s32 %s1448_s11, 3  ;;  %s479_s14 = sadd.s32 8, %s1448_s11 }
 0x140   : > { %s1085_s15 = sshll.u32 %s426_s13, 4  ;;  %s480_s16 = sshra.s32 %s479_s14, 3 }
 0x141   : > { %s1089_s17 = sshll.u32 %s480_s16, 4  ;;  %s430_s18 = scalar_lea.vmem [#allocation2], %s1085_s15 }
 0x142   : > { %s1453_s19 = sshll.u32 %s422_s12, 6  ;;  %s1355_s20 = smov 64  }
 0x143   : > { %s451_s21 = sadd.s32 56, %s1453_s19  ;;  %s506_s24 = sadd.s32 48, %s1453_s19 }
 0x144   : > { %v432_v16 = vld [vmem:[%s430_s18 + $0x8] sm:$0xff]  ;;  %v431_v17 = vld [vmem:[%s430_s18] sm:$0xff]  ;;  %s484_s25 = scalar_lea.vmem [#allocation2], %s1089_s17  ;;  %s452_s26 = sshra.s32 %s451_s21, 3 }
 0x145   : > { %438 = vrot.lane.b32.xlu0 %v432_v16, %s1355_s20  ;;  %443 = vrot.lane.b32.xlu1 %v431_v17, %s1355_s20  ;;  %v433_v18 = vsub.f32 %v1344_v15, %v432_v16  ;;  %v486_v19 = vld [vmem:[%s484_s25 + $0x8] sm:$0xff]  ;;  %s507_s27 = sshra.s32 %s506_s24, 3  ;;  %s1087_s28 = sshll.u32 %s452_s26, 4  ;;  %v485_v28 = vld [vmem:[%s484_s25] sm:$0xff] }
 0x146   : > { %s1091_s29 = sshll.u32 %s507_s27, 4  ;;  %s456_s30 = scalar_lea.vmem [#allocation2], %s1087_s28 }
 0x147   : > { %v434_v20 = vmul.f32 %v433_v18, %v431_v17  ;;  %v458_v22 = vld [vmem:[%s456_s30 + $0x8] sm:$0xff]  ;;  %s533_s4 = sadd.s32 16, %s1448_s11  ;;  %s560_s5 = sadd.s32 40, %s1453_s19  ;;  %v457_v26 = vld [vmem:[%s456_s30] sm:$0xff] }
 0x148   : > { %v459_v23 = vsub.f32 %v1340_v14, %v458_v22  ;;  %s511_s6 = scalar_lea.vmem [#allocation2], %s1091_s29  ;;  %s534_s7 = sshra.s32 %s533_s4, 3 }
 0x149   : > { %v1459_v21 = vadd.f32 %v434_v20, %v432_v16  ;;  %492 = vrot.lane.b32.xlu1 %v486_v19, %s1355_s20  ;;  %464 = vrot.lane.b32.xlu0 %v458_v22, %s1355_s20  ;;  %v513_v24 = vld [vmem:[%s511_s6 + $0x8] sm:$0xff]  ;;  %s561_s8 = sshra.s32 %s560_s5, 3  ;;  %s1093_s0 = sshll.u32 %s534_s7, 4  ;;  %v512_v35 = vld [vmem:[%s511_s6] sm:$0xff] }
 0x14a   : > { %v460_v27 = vmul.f32 %v459_v23, %v457_v26  ;;  %s1095_s9 = sshll.u32 %s561_s8, 4  ;;  %s587_s1 = sadd.s32 24, %s1448_s11 }
 0x14b   : > { %v487_v25 = vsub.f32 %v1459_v21, %v486_v19  ;;  %s538_s10 = scalar_lea.vmem [#allocation2], %s1093_s0  ;;  %s588_s12 = sshra.s32 %s587_s1, 3  ;;  %1222 = vtanh.f32 %v1459_v21 }
 0x14c   : > { %v1469_v31 = vadd.f32 %v460_v27, %v458_v22  ;;  %v540_v32 = vld [vmem:[%s538_s10 + $0x8] sm:$0xff]  ;;  %s614_s13 = sadd.s32 32, %s1453_s19  ;;  %s1097_s14 = sshll.u32 %s588_s12, 4  ;;  %v539_v39 = vld [vmem:[%s538_s10] sm:$0xff] }
 0x14d   : > { %519 = vrot.lane.b32.xlu1 %v513_v24, %s1355_s20  ;;  %v488_v30 = vmul.f32 %v487_v25, %v485_v28  ;;  %469 = vrot.lane.b32.xlu0 %v457_v26, %s1355_s20  ;;  %s1477_s15 = sshra.s32 %s614_s13, 3  ;;  %s641_s16 = sadd.s32 32, %s1448_s11 }
 0x14e   : > { %v514_v34 = vsub.f32 %v1469_v31, %v513_v24  ;;  %s565_s17 = scalar_lea.vmem [#allocation2], %s1095_s9  ;;  %s642_s18 = sshra.s32 %s641_s16, 3  ;;  %1224 = vtanh.f32 %v1469_v31 }
 0x14f   : > { %v1472_v33 = vadd.f32 %v488_v30, %v486_v19  ;;  %v567_v37 = vld [vmem:[%s565_s17 + $0x8] sm:$0xff]  ;;  %s1099_s21 = sshll.u32 %s1477_s15, 4  ;;  %s668_s24 = sadd.s32 24, %s1453_s19  ;;  %v566_v45 = vld [vmem:[%s565_s17] sm:$0xff] }
 0x150   : > { %v515_v38 = vmul.f32 %v514_v34, %v512_v35  ;;  %s592_s25 = scalar_lea.vmem [#allocation2], %s1097_s14  ;;  %s1101_s26 = sshll.u32 %s642_s18, 4 }
 0x151   : > { %546 = vrot.lane.b32.xlu1 %v540_v32, %s1355_s20  ;;  %v541_v36 = vsub.f32 %v1472_v33, %v540_v32  ;;  %497 = vrot.lane.b32.xlu0 %v485_v28, %s1355_s20  ;;  %v594_v43 = vld [vmem:[%s592_s25 + $0x8] sm:$0xff]  ;;  %s695_s27 = sadd.s32 40, %s1448_s11  ;;  %v593_v48 = vld [vmem:[%s592_s25] sm:$0xff]  ;;  %s669_s28 = sshra.s32 %s668_s24, 3  ;;  %1226 = vtanh.f32 %v1472_v33 }
 0x152   : > { %v1481_v41 = vadd.f32 %v515_v38, %v513_v24  ;;  %s1493_s29 = sshra.s32 %s695_s27, 3  ;;  %s619_s30 = scalar_lea.vmem [#allocation2], %s1099_s21 }
 0x153   : > { %v542_v40 = vmul.f32 %v541_v36, %v539_v39  ;;  %v621_v50 = vld [vmem:[%s619_s30 + $0x8] sm:$0xff]  ;;  %s1103_s4 = sshll.u32 %s669_s28, 4  ;;  %s722_s5 = sadd.s32 16, %s1453_s19  ;;  %v620_v54 = vld [vmem:[%s619_s30] sm:$0xff] }
 0x154   : > { %v568_v44 = vsub.f32 %v1481_v41, %v567_v37  ;;  %s646_s6 = scalar_lea.vmem [#allocation2], %s1101_s26  ;;  %s1105_s7 = sshll.u32 %s1493_s29, 4  ;;  %1228 = vtanh.f32 %v1481_v41 }
 0x155   : > { %573 = vrot.lane.b32.xlu1 %v567_v37, %s1355_s20  ;;  %v1485_v42 = vadd.f32 %v542_v40, %v540_v32  ;;  %524 = vrot.lane.b32.xlu0 %v512_v35, %s1355_s20  ;;  %v648_v53 = vld [vmem:[%s646_s6 + $0x8] sm:$0xff]  ;;  %s749_s8 = sadd.s32 48, %s1448_s11  ;;  %v647_v57 = vld [vmem:[%s646_s6] sm:$0xff]  ;;  %s723_s0 = sshra.s32 %s722_s5, 3  ;;  %v1223_v35 = vpop.eup %1222 }
 0x156   : > { %v569_v47 = vmul.f32 %v568_v44, %v566_v45  ;;  %s750_s9 = sshra.s32 %s749_s8, 3  ;;  %s673_s1 = scalar_lea.vmem [#allocation2], %s1103_s4 }
 0x157   : > { %v595_v46 = vsub.f32 %v1485_v42, %v594_v43  ;;  %v675_v60 = vld [vmem:[%s673_s1 + $0x8] sm:$0xff]  ;;  %s1107_s10 = sshll.u32 %s723_s0, 4  ;;  %s776_s12 = sadd.s32 8, %s1453_s19  ;;  %v674_v0 = vld [vmem:[%s673_s1] sm:$0xff]  ;;  %1230 = vtanh.f32 %v1485_v42 }
 0x158   : > { %v1496_v51 = vadd.f32 %v569_v47, %v567_v37  ;;  %s700_s13 = scalar_lea.vmem [#allocation2], %s1105_s7  ;;  %s1109_s14 = sshll.u32 %s750_s9, 4 }
 0x159   : > { %600 = vrot.lane.b32.xlu1 %v594_v43, %s1355_s20  ;;  %v596_v49 = vmul.f32 %v595_v46, %v593_v48  ;;  %551 = vrot.lane.b32.xlu0 %v539_v39, %s1355_s20  ;;  %v702_v62 = vld [vmem:[%s700_s13 + $0x8] sm:$0xff]  ;;  %s803_s15 = sadd.s32 56, %s1448_s11  ;;  %v701_v3 = vld [vmem:[%s700_s13] sm:$0xff]  ;;  %s777_s16 = sshra.s32 %s776_s12, 3 }
 0x15a   : > { %v622_v29 = vsub.f32 %v1496_v51, %v621_v50  ;;  %s804_s17 = sshra.s32 %s803_s15, 3  ;;  %s727_s18 = scalar_lea.vmem [#allocation2], %s1107_s10  ;;  %1232 = vtanh.f32 %v1496_v51 }
 0x15b   : > { %v1498_v52 = vadd.f32 %v596_v49, %v594_v43  ;;  %v729_v6 = vld [vmem:[%s727_s18 + $0x8] sm:$0xff]  ;;  %s1111_s21 = sshll.u32 %s777_s16, 4  ;;  %s754_s24 = scalar_lea.vmem [#allocation2], %s1109_s14  ;;  %v728_v10 = vld [vmem:[%s727_s18] sm:$0xff]  ;;  %v1225_v43 = vpop.eup %1224 }
 0x15c   : > { %v623_v56 = vmul.f32 %v622_v29, %v620_v54  ;;  %v756_v8 = vld [vmem:[%s754_s24 + $0x8] sm:$0xff]  ;;  %s1113_s25 = sshll.u32 %s804_s17, 4  ;;  %v755_v13 = vld [vmem:[%s754_s24] sm:$0xff]  ;;  %s830_s26 = sshra.s32 %s1453_s19, 3  ;;  %v1227_v33 = vpop.eup %1226 }
 0x15d   : > { %627 = vrot.lane.b32.xlu1 %v621_v50, %s1355_s20  ;;  %v649_v55 = vsub.f32 %v1498_v52, %v648_v53  ;;  %578 = vrot.lane.b32.xlu0 %v566_v45, %s1355_s20  ;;  %s781_s27 = scalar_lea.vmem [#allocation2], %s1111_s21  ;;  %s1115_s28 = sshll.u32 %s830_s26, 4  ;;  %1234 = vtanh.f32 %v1498_v52 }
 0x15e   : > { %v1507_v59 = vadd.f32 %v623_v56, %v621_v50  ;;  %v783_v16 = vld [vmem:[%s781_s27 + $0x8] sm:$0xff]  ;;  %s808_s29 = scalar_lea.vmem [#allocation2], %s1113_s25  ;;  %v782_v20 = vld [vmem:[%s781_s27] sm:$0xff]  ;;  %s834_s30 = scalar_lea.vmem [#allocation2], %s1115_s28  ;;  %v1229_v50 = vpop.eup %1228 }
 0x15f   : > { %v650_v58 = vmul.f32 %v649_v55, %v647_v57  ;;  %v810_v18 = vld [vmem:[%s808_s29 + $0x8] sm:$0xff]  ;;  %v809_v24 = vld [vmem:[%s808_s29] sm:$0xff]  ;;  %s1565_s4 = scalar_lea.vmem [#allocation8], %s1453_s19  ;;  %s418_s2 = sadd.s32 1, %s1348_s2  }
 0x160   : > { %v676_v63 = vsub.f32 %v1507_v59, %v675_v60  ;;  %v836_v27 = vld [vmem:[%s834_s30 + $0x8] sm:$0xff]  ;;  %v835_v32 = vld [vmem:[%s834_s30] sm:$0xff]  ;;  %1236 = vtanh.f32 %v1507_v59  ;;  %p415_p2 = scmp.ge.s32.totalorder %s418_s2, 2  }
 0x161   : > { %654 = vrot.lane.b32.xlu1 %v648_v53, %s1355_s20  ;;  %v1510_v61 = vadd.f32 %v650_v58, %v648_v53  ;;  %605 = vrot.lane.b32.xlu0 %v593_v48, %s1355_s20  ;;  %v1231_v51 = vpop.eup %1230 }
 0x162   : > { %v677_v2 = vmul.f32 %v676_v63, %v674_v0 }
 0x163   : > { %v703_v1 = vsub.f32 %v1510_v61, %v702_v62  ;;  %1238 = vtanh.f32 %v1510_v61 }
 0x164   : > { %v1519_v5 = vadd.f32 %v677_v2, %v675_v60  ;;  %v1233_v63 = vpop.eup %1232 }
 0x165   : > { %681 = vrot.lane.b32.xlu1 %v675_v60, %s1355_s20  ;;  %v704_v4 = vmul.f32 %v703_v1, %v701_v3  ;;  %632 = vrot.lane.b32.xlu0 %v620_v54, %s1355_s20 }
 0x166   : > { %v730_v9 = vsub.f32 %v1519_v5, %v729_v6  ;;  %1240 = vtanh.f32 %v1519_v5 }
 0x167   : > { %v1521_v7 = vadd.f32 %v704_v4, %v702_v62  ;;  %v1235_v4 = vpop.eup %1234 }
 0x168   : > { %v731_v12 = vmul.f32 %v730_v9, %v728_v10 }
 0x169   : > { %708 = vrot.lane.b32.xlu1 %v702_v62, %s1355_s20  ;;  %v757_v11 = vsub.f32 %v1521_v7, %v756_v8  ;;  %659 = vrot.lane.b32.xlu0 %v647_v57, %s1355_s20  ;;  %1242 = vtanh.f32 %v1521_v7 }
 0x16a   : > { %v1528_v15 = vadd.f32 %v731_v12, %v729_v6 }
 0x16b   : > { %v758_v14 = vmul.f32 %v757_v11, %v755_v13  ;;  %v1237_v11 = vpop.eup %1236 }
 0x16c   : > { %v784_v19 = vsub.f32 %v1528_v15, %v783_v16  ;;  %1244 = vtanh.f32 %v1528_v15 }
 0x16d   : > { %735 = vrot.lane.b32.xlu1 %v729_v6, %s1355_s20  ;;  %v1531_v17 = vadd.f32 %v758_v14, %v756_v8  ;;  %686 = vrot.lane.b32.xlu0 %v674_v0, %s1355_s20 }
 0x16e   : > { %v785_v23 = vmul.f32 %v784_v19, %v782_v20  ;;  %v1239_v19 = vpop.eup %1238 }
 0x16f   : > { %v811_v22 = vsub.f32 %v1531_v17, %v810_v18  ;;  %1246 = vtanh.f32 %v1531_v17 }
 0x170   : > { %v1538_v26 = vadd.f32 %v785_v23, %v783_v16 }
 0x171   : > { %762 = vrot.lane.b32.xlu1 %v756_v8, %s1355_s20  ;;  %v812_v25 = vmul.f32 %v811_v22, %v809_v24  ;;  %713 = vrot.lane.b32.xlu0 %v701_v3, %s1355_s20 }
 0x172   : > { %v837_v30 = vsub.f32 %v1538_v26, %v836_v27  ;;  %1248 = vtanh.f32 %v1538_v26 }
 0x173   : > { %v1540_v28 = vadd.f32 %v812_v25, %v810_v18   ;;  %v1241_v25 = vpop.eup %1240 }
 0x174   : > { %v838_v34 = vmul.f32 %v837_v30, %v835_v32 }
 0x175   : > { %789 = vrot.lane.b32.xlu1 %v783_v16, %s1355_s20  ;;  %740 = vrot.lane.b32.xlu0 %v728_v10, %s1355_s20 }
 0x176   : > { %v1545_v14 = vadd.f32 %v838_v34, %v836_v27  }
 0x178   : > { %1250 = vtanh.f32 %v1545_v14 }
 0x179   : > { %816 = vrot.lane.b32.xlu1 %v810_v18, %s1355_s20  ;;  %767 = vrot.lane.b32.xlu0 %v755_v13, %s1355_s20  ;;  %1252 = vtanh.f32 %v1540_v28 }
 0x17d   : > { %842 = vrot.lane.b32.xlu1 %v836_v27, %s1355_s20  ;;  %794 = vrot.lane.b32.xlu0 %v782_v20, %s1355_s20 }
 0x181   : > { %847 = vrot.lane.b32.xlu1 %v835_v32, %s1355_s20  ;;  %821 = vrot.lane.b32.xlu0 %v809_v24, %s1355_s20  ;;  %s1559_s20 = scalar_lea.vmem [#allocation8], %s1448_s11  ;;  %s1356_s11 = smov (%p415_p2), [#allocation8]  }
 0x182   :  { %s860_s19 = sshll.u32 (%p415_p2), %s1356_s11, 4  ;;  %s861_s19 = int_to_ptr.vmem [resolvable:$true] %s860_s19 }
 0x183   :  { %s1298_s5 = scalar_lea.vmem (%p415_p2), %s861_s19, 2048  ;;  %p1303_p4 = scmp.lt.s32.totalorder (%p415_p2), %s861_s19, %s861_s19 }
 0x184   :  { %p1299_p3 = scmp.ne.s32.totalorder (%p415_p2), %s861_s19, %s1298_s5  ;;  %p1304_p5 = scmp.lt.s32.totalorder (%p415_p2), %s1298_s5, %s1298_s5 }
 0x186   :  { %p1305_p6 = por (%p415_p2), %p1304_p5, %p1303_p4 }
 0x188   :  { %p1306_p7 = pnand (%p415_p2), %p1305_p6, %p1299_p3 }
 0x1b7   : > { %v439_v36 = vpop.permute.xlu0 %438  ;;  %v444_v37 = vpop.permute.xlu1 %443 }
 0x1b8   : > { %v441_v38 = vsub.f32 %v1223_v35, %v439_v36  ;;  %v1243_v35 = vpop.eup %1242 }
 0x1ba   : > { %v446_v39 = vmul.f32 %v444_v37, %v441_v38 }
 0x1bb   : > { %v493_v40 = vpop.permute.xlu1 %492  ;;  %v465_v45 = vpop.permute.xlu0 %464 }
 0x1bc   : > { %v447_v44 = vadd.f32 %v446_v39, %v439_v36  ;;  %v467_v21 = vsub.f32 %v1225_v43, %v465_v45  ;;  %v495_v41 = vsub.f32 %v1227_v33, %v493_v40 }
 0x1be   : > { %450 = vst.msk [vmem:[%s1559_s20] sm:$0xff] %vm92_vm0, %v447_v44 }
 0x1bf   : > { %v520_v31 = vpop.permute.xlu1 %519  ;;  %v470_v46 = vpop.permute.xlu0 %469 }
 0x1c0   : > { %v472_v47 = vmul.f32 %v470_v46, %v467_v21  ;;  %v522_v29 = vsub.f32 %v1229_v50, %v520_v31 }
 0x1c2   : > { %v473_v48 = vadd.f32 %v472_v47, %v465_v45 }
 0x1c3   : > { %v547_v49 = vpop.permute.xlu1 %546  ;;  %v498_v53 = vpop.permute.xlu0 %497 }
 0x1c4   : > { %1016 = vst.msk [vmem:[%s1565_s4 + $0x38] sm:$0xff] %vm477_vm1, %v473_v48  ;;  %v500_v42 = vmul.f32 %v498_v53, %v495_v41  ;;  %v549_v58 = vsub.f32 %v1231_v51, %v547_v49 }
 0x1c6   : > { %v501_v54 = vadd.f32 %v500_v42, %v493_v40  ;;  %v1245_v40 = vpop.eup %1244 }
 0x1c7   : > { %v574_v55 = vpop.permute.xlu1 %573  ;;  %v525_v56 = vpop.permute.xlu0 %524 }
 0x1c8   : > { %1021 = vst.msk [vmem:[%s1559_s20 + $0x8] sm:$0xff] %vm92_vm0, %v501_v54  ;;  %v527_v57 = vmul.f32 %v525_v56, %v522_v29  ;;  %v576_v1 = vsub.f32 %v1233_v63, %v574_v55 }
 0x1ca   : > { %v528_v60 = vadd.f32 %v527_v57, %v520_v31  ;;  %v1247_v31 = vpop.eup %1246 }
 0x1cb   : > { %v601_v62 = vpop.permute.xlu1 %600  ;;  %v552_v0 = vpop.permute.xlu0 %551 }
 0x1cc   : > { %1026 = vst.msk [vmem:[%s1565_s4 + $0x30] sm:$0xff] %vm477_vm1, %v528_v60  ;;  %v554_v52 = vmul.f32 %v552_v0, %v549_v58  ;;  %v603_v8 = vsub.f32 %v1235_v4, %v601_v62  ;;  %v1249_v48 = vpop.eup %1248 }
 0x1cd   : > { %v1251_v50 = vpop.eup %1250 }
 0x1ce   : > { %v555_v2 = vadd.f32 %v554_v52, %v547_v49 }
 0x1cf   : > { %v628_v3 = vpop.permute.xlu1 %627  ;;  %v579_v6 = vpop.permute.xlu0 %578 }
 0x1d0   : > { %1031 = vst.msk [vmem:[%s1559_s20 + $0x10] sm:$0xff] %vm92_vm0, %v555_v2  ;;  %v581_v59 = vmul.f32 %v579_v6, %v576_v1  ;;  %v630_v13 = vsub.f32 %v1237_v11, %v628_v3 }
 0x1d2   : > { %v582_v9 = vadd.f32 %v581_v59, %v574_v55  ;;  %v1253_v55 = vpop.eup %1252 }
 0x1d3   : > { %v655_v10 = vpop.permute.xlu1 %654  ;;  %v606_v12 = vpop.permute.xlu0 %605 }
 0x1d4   : > { %1036 = vst.msk [vmem:[%s1565_s4 + $0x28] sm:$0xff] %vm477_vm1, %v582_v9  ;;  %v608_v61 = vmul.f32 %v606_v12, %v603_v8  ;;  %v657_v22 = vsub.f32 %v1239_v19, %v655_v10 }
 0x1d6   : > { %v609_v16 = vadd.f32 %v608_v61, %v601_v62 }
 0x1d7   : > { %v682_v18 = vpop.permute.xlu1 %681  ;;  %v633_v20 = vpop.permute.xlu0 %632 }
 0x1d8   : > { %1041 = vst.msk [vmem:[%s1559_s20 + $0x18] sm:$0xff] %vm92_vm0, %v609_v16  ;;  %v635_v5 = vmul.f32 %v633_v20, %v630_v13  ;;  %v684_v7 = vsub.f32 %v1241_v25, %v682_v18 }
 0x1da   : > { %v636_v23 = vadd.f32 %v635_v5, %v628_v3 }
 0x1db   : > { %v709_v24 = vpop.permute.xlu1 %708  ;;  %v660_v27 = vpop.permute.xlu0 %659 }
 0x1dc   : > { %1046 = vst.msk [vmem:[%s1565_s4 + $0x20] sm:$0xff] %vm477_vm1, %v636_v23  ;;  %v662_v30 = vmul.f32 %v660_v27, %v657_v22  ;;  %v711_v15 = vsub.f32 %v1243_v35, %v709_v24 }
 0x1de   : > { %v663_v32 = vadd.f32 %v662_v30, %v655_v10 }
 0x1df   : > { %v736_v34 = vpop.permute.xlu1 %735  ;;  %v687_v36 = vpop.permute.xlu0 %686 }
 0x1e0   : > { %1051 = vst.msk [vmem:[%s1559_s20 + $0x20] sm:$0xff] %vm92_vm0, %v663_v32  ;;  %v689_v37 = vmul.f32 %v687_v36, %v684_v7  ;;  %v738_v44 = vsub.f32 %v1245_v40, %v736_v34 }
 0x1e2   : > { %v690_v38 = vadd.f32 %v689_v37, %v682_v18 }
 0x1e3   : > { %v763_v39 = vpop.permute.xlu1 %762  ;;  %v714_v43 = vpop.permute.xlu0 %713 }
 0x1e4   : > { %1056 = vst.msk [vmem:[%s1565_s4 + $0x18] sm:$0xff] %vm477_vm1, %v690_v38  ;;  %v716_v17 = vmul.f32 %v714_v43, %v711_v15  ;;  %v765_v46 = vsub.f32 %v1247_v31, %v763_v39  ;;  %v1635_v15 = vmov %v1540_v28 }
 0x1e6   : > { %v717_v45 = vadd.f32 %v716_v17, %v709_v24 }
 0x1e7   : > { %v790_v21 = vpop.permute.xlu1 %789  ;;  %v741_v33 = vpop.permute.xlu0 %740 }
 0x1e8   : > { %1061 = vst.msk [vmem:[%s1559_s20 + $0x28] sm:$0xff] %vm92_vm0, %v717_v45  ;;  %v743_v26 = vmul.f32 %v741_v33, %v738_v44  ;;  %v792_v42 = vsub.f32 %v1249_v48, %v790_v21 }
 0x1ea   : > { %v744_v47 = vadd.f32 %v743_v26, %v736_v34 }
 0x1eb   : > { %v817_v41 = vpop.permute.xlu1 %816  ;;  %v768_v49 = vpop.permute.xlu0 %767 }
 0x1ec   : > { %1066 = vst.msk [vmem:[%s1565_s4 + $0x10] sm:$0xff] %vm477_vm1, %v744_v47  ;;  %v770_v53 = vmul.f32 %v768_v49, %v765_v46  ;;  %v819_v58 = vsub.f32 %v1253_v55, %v817_v41 }
 0x1ee   : > { %v771_v29 = vadd.f32 %v770_v53, %v763_v39 }
 0x1ef   : > { %v843_v54 = vpop.permute.xlu1 %842  ;;  %v795_v56 = vpop.permute.xlu0 %794 }
 0x1f0   : > { %v845_v51 = vsub.f32 %v1251_v50, %v843_v54  ;;  %1071 = vst.msk [vmem:[%s1559_s20 + $0x30] sm:$0xff] %vm92_vm0, %v771_v29  ;;  %v797_v57 = vmul.f32 %v795_v56, %v792_v42 }
 0x1f2   : > { %v798_v60 = vadd.f32 %v797_v57, %v790_v21 }
 0x1f3   : > { %v848_v62 = vpop.permute.xlu1 %847  ;;  %v822_v0 = vpop.permute.xlu0 %821  ;;  %417 = sbr.rel (!%p415_p2) target bundleno = 318 (0x13e), region = 79 }
 0x1f4   : > { %v850_v63 = vmul.f32 %v848_v62, %v845_v51  ;;  %1076 = vst.msk [vmem:[%s1565_s4 + $0x8] sm:$0xff] %vm477_vm1, %v798_v60  ;;  %v824_v52 = vmul.f32 %v822_v0, %v819_v58 }
 0x1f6   : > { %v851_v1 = vadd.f32 %v850_v63, %v843_v54  ;;  %v825_v2 = vadd.f32 %v824_v52, %v817_v41 }
 0x1f8   : > { %1081 = vst.msk [vmem:[%s1559_s20 + $0x38] sm:$0xff] %vm92_vm0, %v825_v2 }
 0x1f9   : > { %854 = vst.msk [vmem:[%s1565_s4] sm:$0xff] %vm477_vm1, %v851_v1 }
 0x1fa   :  { %1309 = shalt.err (!%p1306_p7)
}
 0x1fb   :  { %s1310_s8 = scalar_lea.hbm %s1634_s3, 2048 }
 0x1fc   :  { %p1311_p8 = scmp.ne.s32.totalorder %s1634_s3, %s1310_s8  ;;  %p1314_p9 = scmp.lt.u32.totalorder %s1310_s8, %s1634_s3 }
 0x1fe   :  { %p1316_p10 = pnand %p1314_p9, %p1311_p8 }
 0x200   :  { %1319 = shalt.err (!%p1316_p10)
}
 0x201   :  { %866 = dma.vmem_to_hbm [thread:$0]  %s861_s19, 2048, %s1634_s3, [#allocation5], %s1351_s22, %s1351_s22, %s1352_s23  }
 0x202   :  { %1336 = dma.done.wait [#allocation5], 2048  }
 0x203   :  { %1337 = vsyncadd [#allocation5], 4294965248 }
 0x204   :  { %870 = vsyncpa [#allocation4], 1 }
 0x205   :  { %871 = vsyncpa [#allocation7], 1 }
 0x206   :  { %872 = vsyncpa [#allocation5], 1 }

</bundles_post_ra>
